<compile_context>
chip_gen: v7x
topology: tpu7x:2x2x1
jax: 0.10.0
libtpu: 0.0.40
codegen_flags: <defaults>
</compile_context>

<pallas_src>
import functools

import jax
import jax.numpy as jnp
from jax.experimental import pallas as pl
from jax.experimental.pallas import tpu as pltpu

EPS = 1e-5  # torch.nn.InstanceNorm2d default


def _conv3x3_in_stage(y, w_ref, b_ref, col_is0, col_isW1, *, C, H, W, relu):
    """ReflectionPad2d(1) -> Conv2d(C,C,3) (+bias) -> InstanceNorm2d [-> ReLU].

    y        : (C, H*W) f32, channel-major, flat row-major spatial lanes.
    w_ref    : (9, C, C) VMEM ref, w_ref[dh*3+dw] = w[:, :, dh, dw] (out, in).
    b_ref    : (C, 1) VMEM ref.
    col_is0  : (C, H*W) bool, lane's spatial column == 0.
    col_isW1 : (C, H*W) bool, lane's spatial column == W-1.
    Returns (C, H*W) f32.
    """
    HW = H * W
    # Vertical reflection pad in flat lanes: rows [1, 0..H-1, H-2].
    top = y[:, W:2 * W]
    bot = y[:, (H - 2) * W:(H - 1) * W]
    yv = jnp.concatenate([top, y, bot], axis=1)            # (C, (H+2)*W)

    acc = None
    for dh in range(3):
        v = yv[:, dh * W:dh * W + HW]                      # padded rows h+dh
        v_m1 = pltpu.roll(v, 1, 1)                         # value at flat i-1
        v_p1 = pltpu.roll(v, HW - 1, 1)                    # value at flat i+1
        # Horizontal reflection: fix the two boundary columns of each row
        # (the roll wrap-around values are always masked out here).
        taps = (jnp.where(col_is0, v_p1, v_m1),            # input col w-1
                v,                                         # input col w
                jnp.where(col_isW1, v_m1, v_p1))           # input col w+1
        for dw in range(3):
            p = jnp.dot(w_ref[dh * 3 + dw], taps[dw],
                        preferred_element_type=jnp.float32,
                        precision=jax.lax.Precision.HIGHEST)
            acc = p if acc is None else acc + p
    acc = acc + b_ref[...]                                 # (C,1) broadcast

    # InstanceNorm2d (affine=False): one lane-reduction per statistic for all
    # channels at once; two-pass variance.
    inv_hw = 1.0 / float(HW)
    mean = jnp.sum(acc, axis=1, keepdims=True) * inv_hw
    ctr = acc - mean
    var = jnp.sum(ctr * ctr, axis=1, keepdims=True) * inv_hw
    out = ctr * jax.lax.rsqrt(var + EPS)
    if relu:
        out = jnp.maximum(out, 0.0)
    return out


def resblock_kernel(x_ref, col_ref, w1_ref, b1_ref, w2_ref, b2_ref, o_ref,
                    *, C, H, W):
    HW = H * W
    colidx = col_ref[...]                                  # (1, HW) int32
    # Hoisted once per grid step (JAX does not CSE broadcast_in_dim).
    col_is0 = jnp.broadcast_to(colidx == 0, (C, HW))
    col_isW1 = jnp.broadcast_to(colidx == (W - 1), (C, HW))

    x = x_ref[0].astype(jnp.float32)                       # (C, H*W)
    y = _conv3x3_in_stage(x, w1_ref, b1_ref, col_is0, col_isW1,
                          C=C, H=H, W=W, relu=True)
    y = _conv3x3_in_stage(y, w2_ref, b2_ref, col_is0, col_isW1,
                          C=C, H=H, W=W, relu=False)
    # Residual add (x re-read so it is not held live across both stages) and
    # one lane-dense store of the whole image.
    o_ref[0] = (x_ref[0].astype(jnp.float32) + y).astype(o_ref.dtype)


def residual_block(x, w1, b1, w2, b2):
    N, C, H, W = x.shape
    assert H >= 2 and W >= 2, "ReflectionPad2d(1) requires H >= 2 and W >= 2"
    HW = H * W

    # Layout plumbing in XLA: channel-major flat-spatial activations, compact
    # per-tap weight matrices, column-vector biases, lane->column index map.
    x3 = x.reshape(N, C, HW)
    wk1 = jnp.transpose(w1, (2, 3, 0, 1)).reshape(9, C, C).astype(jnp.float32)
    wk2 = jnp.transpose(w2, (2, 3, 0, 1)).reshape(9, C, C).astype(jnp.float32)
    bk1 = b1.reshape(C, 1).astype(jnp.float32)
    bk2 = b2.reshape(C, 1).astype(jnp.float32)
    colidx = (jnp.arange(HW, dtype=jnp.int32) % W).reshape(1, HW)

    # VMEM budget: double-buffered in/out image blocks + weights + working set.
    block_bytes = C * HW * x.dtype.itemsize
    weight_bytes = 2 * (9 * C * C + C) * 4
    work_bytes = 10 * C * HW * 4
    vmem_limit = int(min(max(4 * block_bytes + weight_bytes + work_bytes
                             + (1 << 20), 16 * 1024 * 1024),
                         64 * 1024 * 1024))

    kernel = functools.partial(resblock_kernel, C=C, H=H, W=W)
    out3 = pl.pallas_call(
        kernel,
        out_shape=jax.ShapeDtypeStruct((N, C, HW), x.dtype),
        grid_spec=pltpu.PrefetchScalarGridSpec(
            num_scalar_prefetch=0,
            grid=(N,),
            in_specs=[
                pl.BlockSpec((1, C, HW), lambda i: (i, 0, 0)),   # x image
                pl.BlockSpec((1, HW), lambda i: (0, 0)),         # column idx
                pl.BlockSpec((9, C, C), lambda i: (0, 0, 0)),    # w1 taps
                pl.BlockSpec((C, 1), lambda i: (0, 0)),          # b1
                pl.BlockSpec((9, C, C), lambda i: (0, 0, 0)),    # w2 taps
                pl.BlockSpec((C, 1), lambda i: (0, 0)),          # b2
            ],
            out_specs=pl.BlockSpec((1, C, HW), lambda i: (i, 0, 0)),
        ),
        compiler_params=pltpu.CompilerParams(
            dimension_semantics=("parallel",),
            vmem_limit_bytes=vmem_limit,
        ),
    )(x3, colidx, wk1, bk1, wk2, bk2)
    return out3.reshape(N, C, H, W)


def reference(x, w1, b1, w2, b2):
    # Pure-JAX reference of the PyTorch forward pass.
    def conv(inp, w, b):
        p = jnp.pad(inp, ((0, 0), (0, 0), (1, 1), (1, 1)), mode="reflect")
        out = jax.lax.conv_general_dilated(
            p, w, window_strides=(1, 1), padding="VALID",
            dimension_numbers=("NCHW", "OIHW", "NCHW"),
            precision=jax.lax.Precision.HIGHEST)
        return out + b[None, :, None, None]

    def inorm(v):
        m = v.mean(axis=(2, 3), keepdims=True)
        var = ((v - m) ** 2).mean(axis=(2, 3), keepdims=True)
        return (v - m) * jax.lax.rsqrt(var + EPS)

    y = jax.nn.relu(inorm(conv(x, w1, b1)))
    y = inorm(conv(y, w2, b2))
    return x + y


if __name__ == "__main__":
    N, C, H, W = 2, 4, 16, 16
    key = jax.random.PRNGKey(0)
    kx, kw1, kb1, kw2, kb2 = jax.random.split(key, 5)

    x = jax.random.normal(kx, (N, C, H, W), jnp.float32)

    # Deterministic Conv2d-style init (uniform in +/- 1/sqrt(fan_in)).
    fan_in = C * 3 * 3
    bound = 1.0 / (fan_in ** 0.5)
    w1 = jax.random.uniform(kw1, (C, C, 3, 3), jnp.float32, -bound, bound)
    b1 = jax.random.uniform(kb1, (C,), jnp.float32, -bound, bound)
    w2 = jax.random.uniform(kw2, (C, C, 3, 3), jnp.float32, -bound, bound)
    b2 = jax.random.uniform(kb2, (C,), jnp.float32, -bound, bound)

    out = jax.block_until_ready(residual_block(x, w1, b1, w2, b2))
    ref = jax.block_until_ready(reference(x, w1, b1, w2, b2))

    assert out.shape == (N, C, H, W) and out.dtype == jnp.float32
    err = float(jnp.max(jnp.abs(out - ref)))
    assert jnp.allclose(out, ref, atol=1e-4, rtol=1e-3), (
        "max abs err %e" % err)

    print("KERNEL_OK")
</pallas_src>

<mosaic_0001>
module attributes {stable_mosaic.version = 11 : i64} {
  func.func @resblock_kernel(%arg0: i32, %arg1: memref<1x4x256xf32, #tpu.memory_space<vmem>>, %arg2: memref<1x256xi32, #tpu.memory_space<vmem>>, %arg3: memref<9x4x4xf32, #tpu.memory_space<vmem>>, %arg4: memref<4x1xf32, #tpu.memory_space<vmem>>, %arg5: memref<9x4x4xf32, #tpu.memory_space<vmem>>, %arg6: memref<4x1xf32, #tpu.memory_space<vmem>>, %arg7: memref<1x4x256xf32, #tpu.memory_space<vmem>>) attributes {dimension_semantics = [#tpu.dimension_semantics<parallel>], iteration_bounds = array<i64: 2>, scalar_prefetch = 0 : i64, scratch_operands = 0 : i64, tpu.core_type = #tpu.core_type<tc>, window_params = [{transform_indices = @transform_0, window_bounds = array<i64: 1, 4, 256>}, {pipeline_mode = #tpu.pipeline_mode<synchronous>, transform_indices = @transform_1, window_bounds = array<i64: 1, 256>}, {pipeline_mode = #tpu.pipeline_mode<synchronous>, transform_indices = @transform_2, window_bounds = array<i64: 9, 4, 4>}, {pipeline_mode = #tpu.pipeline_mode<synchronous>, transform_indices = @transform_3, window_bounds = array<i64: 4, 1>}, {pipeline_mode = #tpu.pipeline_mode<synchronous>, transform_indices = @transform_4, window_bounds = array<i64: 9, 4, 4>}, {pipeline_mode = #tpu.pipeline_mode<synchronous>, transform_indices = @transform_5, window_bounds = array<i64: 4, 1>}, {transform_indices = @transform_6, window_bounds = array<i64: 1, 4, 256>}]} {
    %c0 = arith.constant 0 : index
    %c0_0 = arith.constant 0 : index
    %0 = vector.load %arg2[%c0, %c0_0] : memref<1x256xi32, #tpu.memory_space<vmem>>, vector<1x256xi32>
    %c0_i32 = arith.constant 0 : i32
    %1 = vector.broadcast %c0_i32 : i32 to vector<1x256xi32>
    %2 = arith.cmpi eq, %0, %1 : vector<1x256xi32>
    %3 = vector.shape_cast %2 : vector<1x256xi1> to vector<1x256xi1>
    %4 = vector.broadcast %3 : vector<1x256xi1> to vector<4x256xi1>
    %c15_i32 = arith.constant 15 : i32
    %5 = vector.broadcast %c15_i32 : i32 to vector<1x256xi32>
    %6 = arith.cmpi eq, %0, %5 : vector<1x256xi32>
    %7 = vector.shape_cast %6 : vector<1x256xi1> to vector<1x256xi1>
    %8 = vector.broadcast %7 : vector<1x256xi1> to vector<4x256xi1>
    %c0_1 = arith.constant 0 : index
    %c0_2 = arith.constant 0 : index
    %c0_3 = arith.constant 0 : index
    %9 = vector.load %arg1[%c0_1, %c0_2, %c0_3] : memref<1x4x256xf32, #tpu.memory_space<vmem>>, vector<1x4x256xf32>
    %10 = vector.shape_cast %9 : vector<1x4x256xf32> to vector<4x256xf32>
    %11 = vector.extract_strided_slice %10 {offsets = [0, 16], sizes = [4, 16], strides = [1, 1]} : vector<4x256xf32> to vector<4x16xf32>
    %12 = vector.extract_strided_slice %10 {offsets = [0, 224], sizes = [4, 16], strides = [1, 1]} : vector<4x256xf32> to vector<4x16xf32>
    %13 = tpu.concatenate %11, %10, %12 in 1 : vector<4x16xf32>, vector<4x256xf32>, vector<4x16xf32> -> vector<4x288xf32>
    %14 = vector.extract_strided_slice %13 {offsets = [0, 0], sizes = [4, 256], strides = [1, 1]} : vector<4x288xf32> to vector<4x256xf32>
    %c1_i32 = arith.constant 1 : i32
    %15 = tpu.dynamic_rotate %14 by %c1_i32 dim 1 : vector<4x256xf32>, i32 -> vector<4x256xf32>
    %c255_i32 = arith.constant 255 : i32
    %16 = tpu.dynamic_rotate %14 by %c255_i32 dim 1 : vector<4x256xf32>, i32 -> vector<4x256xf32>
    %17 = arith.select %4, %16, %15 : vector<4x256xi1>, vector<4x256xf32>
    %18 = arith.select %8, %15, %16 : vector<4x256xi1>, vector<4x256xf32>
    %c0_4 = arith.constant 0 : index
    %c0_5 = arith.constant 0 : index
    %c0_6 = arith.constant 0 : index
    %19 = vector.load %arg3[%c0_4, %c0_5, %c0_6] : memref<9x4x4xf32, #tpu.memory_space<vmem>>, vector<1x4x4xf32>
    %20 = vector.shape_cast %19 : vector<1x4x4xf32> to vector<4x4xf32>
    %cst = arith.constant dense<0.000000e+00> : vector<4x256xf32>
    %21 = tpu.matmul %20, %17, %cst {dimension_numbers = #tpu.dot_dimension_numbers<[1], [0], [0], [1], [0, 0, 1, 1], [], []>, precision = #tpu.contract_precision<fp32>} : vector<4x4xf32>, vector<4x256xf32>, vector<4x256xf32> -> vector<4x256xf32>
    %c1 = arith.constant 1 : index
    %c0_7 = arith.constant 0 : index
    %c0_8 = arith.constant 0 : index
    %22 = vector.load %arg3[%c1, %c0_7, %c0_8] : memref<9x4x4xf32, #tpu.memory_space<vmem>>, vector<1x4x4xf32>
    %23 = vector.shape_cast %22 : vector<1x4x4xf32> to vector<4x4xf32>
    %cst_9 = arith.constant dense<0.000000e+00> : vector<4x256xf32>
    %24 = tpu.matmul %23, %14, %cst_9 {dimension_numbers = #tpu.dot_dimension_numbers<[1], [0], [0], [1], [0, 0, 1, 1], [], []>, precision = #tpu.contract_precision<fp32>} : vector<4x4xf32>, vector<4x256xf32>, vector<4x256xf32> -> vector<4x256xf32>
    %25 = arith.addf %21, %24 : vector<4x256xf32>
    %c2 = arith.constant 2 : index
    %c0_10 = arith.constant 0 : index
    %c0_11 = arith.constant 0 : index
    %26 = vector.load %arg3[%c2, %c0_10, %c0_11] : memref<9x4x4xf32, #tpu.memory_space<vmem>>, vector<1x4x4xf32>
    %27 = vector.shape_cast %26 : vector<1x4x4xf32> to vector<4x4xf32>
    %cst_12 = arith.constant dense<0.000000e+00> : vector<4x256xf32>
    %28 = tpu.matmul %27, %18, %cst_12 {dimension_numbers = #tpu.dot_dimension_numbers<[1], [0], [0], [1], [0, 0, 1, 1], [], []>, precision = #tpu.contract_precision<fp32>} : vector<4x4xf32>, vector<4x256xf32>, vector<4x256xf32> -> vector<4x256xf32>
    %29 = arith.addf %25, %28 : vector<4x256xf32>
    %30 = vector.extract_strided_slice %13 {offsets = [0, 16], sizes = [4, 256], strides = [1, 1]} : vector<4x288xf32> to vector<4x256xf32>
    %c1_i32_13 = arith.constant 1 : i32
    %31 = tpu.dynamic_rotate %30 by %c1_i32_13 dim 1 : vector<4x256xf32>, i32 -> vector<4x256xf32>
    %c255_i32_14 = arith.constant 255 : i32
    %32 = tpu.dynamic_rotate %30 by %c255_i32_14 dim 1 : vector<4x256xf32>, i32 -> vector<4x256xf32>
    %33 = arith.select %4, %32, %31 : vector<4x256xi1>, vector<4x256xf32>
    %34 = arith.select %8, %31, %32 : vector<4x256xi1>, vector<4x256xf32>
    %c3 = arith.constant 3 : index
    %c0_15 = arith.constant 0 : index
    %c0_16 = arith.constant 0 : index
    %35 = vector.load %arg3[%c3, %c0_15, %c0_16] : memref<9x4x4xf32, #tpu.memory_space<vmem>>, vector<1x4x4xf32>
    %36 = vector.shape_cast %35 : vector<1x4x4xf32> to vector<4x4xf32>
    %cst_17 = arith.constant dense<0.000000e+00> : vector<4x256xf32>
    %37 = tpu.matmul %36, %33, %cst_17 {dimension_numbers = #tpu.dot_dimension_numbers<[1], [0], [0], [1], [0, 0, 1, 1], [], []>, precision = #tpu.contract_precision<fp32>} : vector<4x4xf32>, vector<4x256xf32>, vector<4x256xf32> -> vector<4x256xf32>
    %38 = arith.addf %29, %37 : vector<4x256xf32>
    %c4 = arith.constant 4 : index
    %c0_18 = arith.constant 0 : index
    %c0_19 = arith.constant 0 : index
    %39 = vector.load %arg3[%c4, %c0_18, %c0_19] : memref<9x4x4xf32, #tpu.memory_space<vmem>>, vector<1x4x4xf32>
    %40 = vector.shape_cast %39 : vector<1x4x4xf32> to vector<4x4xf32>
    %cst_20 = arith.constant dense<0.000000e+00> : vector<4x256xf32>
    %41 = tpu.matmul %40, %30, %cst_20 {dimension_numbers = #tpu.dot_dimension_numbers<[1], [0], [0], [1], [0, 0, 1, 1], [], []>, precision = #tpu.contract_precision<fp32>} : vector<4x4xf32>, vector<4x256xf32>, vector<4x256xf32> -> vector<4x256xf32>
    %42 = arith.addf %38, %41 : vector<4x256xf32>
    %c5 = arith.constant 5 : index
    %c0_21 = arith.constant 0 : index
    %c0_22 = arith.constant 0 : index
    %43 = vector.load %arg3[%c5, %c0_21, %c0_22] : memref<9x4x4xf32, #tpu.memory_space<vmem>>, vector<1x4x4xf32>
    %44 = vector.shape_cast %43 : vector<1x4x4xf32> to vector<4x4xf32>
    %cst_23 = arith.constant dense<0.000000e+00> : vector<4x256xf32>
    %45 = tpu.matmul %44, %34, %cst_23 {dimension_numbers = #tpu.dot_dimension_numbers<[1], [0], [0], [1], [0, 0, 1, 1], [], []>, precision = #tpu.contract_precision<fp32>} : vector<4x4xf32>, vector<4x256xf32>, vector<4x256xf32> -> vector<4x256xf32>
    %46 = arith.addf %42, %45 : vector<4x256xf32>
    %47 = vector.extract_strided_slice %13 {offsets = [0, 32], sizes = [4, 256], strides = [1, 1]} : vector<4x288xf32> to vector<4x256xf32>
    %c1_i32_24 = arith.constant 1 : i32
    %48 = tpu.dynamic_rotate %47 by %c1_i32_24 dim 1 : vector<4x256xf32>, i32 -> vector<4x256xf32>
    %c255_i32_25 = arith.constant 255 : i32
    %49 = tpu.dynamic_rotate %47 by %c255_i32_25 dim 1 : vector<4x256xf32>, i32 -> vector<4x256xf32>
    %50 = arith.select %4, %49, %48 : vector<4x256xi1>, vector<4x256xf32>
    %51 = arith.select %8, %48, %49 : vector<4x256xi1>, vector<4x256xf32>
    %c6 = arith.constant 6 : index
    %c0_26 = arith.constant 0 : index
    %c0_27 = arith.constant 0 : index
    %52 = vector.load %arg3[%c6, %c0_26, %c0_27] : memref<9x4x4xf32, #tpu.memory_space<vmem>>, vector<1x4x4xf32>
    %53 = vector.shape_cast %52 : vector<1x4x4xf32> to vector<4x4xf32>
    %cst_28 = arith.constant dense<0.000000e+00> : vector<4x256xf32>
    %54 = tpu.matmul %53, %50, %cst_28 {dimension_numbers = #tpu.dot_dimension_numbers<[1], [0], [0], [1], [0, 0, 1, 1], [], []>, precision = #tpu.contract_precision<fp32>} : vector<4x4xf32>, vector<4x256xf32>, vector<4x256xf32> -> vector<4x256xf32>
    %55 = arith.addf %46, %54 : vector<4x256xf32>
    %c7 = arith.constant 7 : index
    %c0_29 = arith.constant 0 : index
    %c0_30 = arith.constant 0 : index
    %56 = vector.load %arg3[%c7, %c0_29, %c0_30] : memref<9x4x4xf32, #tpu.memory_space<vmem>>, vector<1x4x4xf32>
    %57 = vector.shape_cast %56 : vector<1x4x4xf32> to vector<4x4xf32>
    %cst_31 = arith.constant dense<0.000000e+00> : vector<4x256xf32>
    %58 = tpu.matmul %57, %47, %cst_31 {dimension_numbers = #tpu.dot_dimension_numbers<[1], [0], [0], [1], [0, 0, 1, 1], [], []>, precision = #tpu.contract_precision<fp32>} : vector<4x4xf32>, vector<4x256xf32>, vector<4x256xf32> -> vector<4x256xf32>
    %59 = arith.addf %55, %58 : vector<4x256xf32>
    %c8 = arith.constant 8 : index
    %c0_32 = arith.constant 0 : index
    %c0_33 = arith.constant 0 : index
    %60 = vector.load %arg3[%c8, %c0_32, %c0_33] : memref<9x4x4xf32, #tpu.memory_space<vmem>>, vector<1x4x4xf32>
    %61 = vector.shape_cast %60 : vector<1x4x4xf32> to vector<4x4xf32>
    %cst_34 = arith.constant dense<0.000000e+00> : vector<4x256xf32>
    %62 = tpu.matmul %61, %51, %cst_34 {dimension_numbers = #tpu.dot_dimension_numbers<[1], [0], [0], [1], [0, 0, 1, 1], [], []>, precision = #tpu.contract_precision<fp32>} : vector<4x4xf32>, vector<4x256xf32>, vector<4x256xf32> -> vector<4x256xf32>
    %63 = arith.addf %59, %62 : vector<4x256xf32>
    %c0_35 = arith.constant 0 : index
    %c0_36 = arith.constant 0 : index
    %64 = vector.load %arg4[%c0_35, %c0_36] : memref<4x1xf32, #tpu.memory_space<vmem>>, vector<4x1xf32>
    %65 = vector.broadcast %64 : vector<4x1xf32> to vector<4x256xf32>
    %66 = arith.addf %63, %65 : vector<4x256xf32>
    %cst_37 = arith.constant dense<0.000000e+00> : vector<4xf32>
    %67 = vector.multi_reduction <add>, %66, %cst_37 [1] : vector<4x256xf32> to vector<4xf32>
    %68 = vector.shape_cast %67 : vector<4xf32> to vector<4x1xf32>
    %cst_38 = arith.constant 3.906250e-03 : f32
    %69 = vector.broadcast %cst_38 : f32 to vector<4x1xf32>
    %70 = arith.mulf %68, %69 : vector<4x1xf32>
    %71 = vector.broadcast %70 : vector<4x1xf32> to vector<4x256xf32>
    %72 = arith.subf %66, %71 : vector<4x256xf32>
    %73 = arith.mulf %72, %72 : vector<4x256xf32>
    %cst_39 = arith.constant dense<0.000000e+00> : vector<4xf32>
    %74 = vector.multi_reduction <add>, %73, %cst_39 [1] : vector<4x256xf32> to vector<4xf32>
    %75 = vector.shape_cast %74 : vector<4xf32> to vector<4x1xf32>
    %cst_40 = arith.constant 3.906250e-03 : f32
    %76 = vector.broadcast %cst_40 : f32 to vector<4x1xf32>
    %77 = arith.mulf %75, %76 : vector<4x1xf32>
    %cst_41 = arith.constant 9.99999974E-6 : f32
    %78 = vector.broadcast %cst_41 : f32 to vector<4x1xf32>
    %79 = arith.addf %77, %78 : vector<4x1xf32>
    %80 = math.rsqrt %79 : vector<4x1xf32>
    %81 = vector.broadcast %80 : vector<4x1xf32> to vector<4x256xf32>
    %82 = arith.mulf %72, %81 : vector<4x256xf32>
    %cst_42 = arith.constant 0.000000e+00 : f32
    %83 = vector.broadcast %cst_42 : f32 to vector<4x256xf32>
    %84 = arith.maximumf %82, %83 : vector<4x256xf32>
    %85 = vector.extract_strided_slice %84 {offsets = [0, 16], sizes = [4, 16], strides = [1, 1]} : vector<4x256xf32> to vector<4x16xf32>
    %86 = vector.extract_strided_slice %84 {offsets = [0, 224], sizes = [4, 16], strides = [1, 1]} : vector<4x256xf32> to vector<4x16xf32>
    %87 = tpu.concatenate %85, %84, %86 in 1 : vector<4x16xf32>, vector<4x256xf32>, vector<4x16xf32> -> vector<4x288xf32>
    %88 = vector.extract_strided_slice %87 {offsets = [0, 0], sizes = [4, 256], strides = [1, 1]} : vector<4x288xf32> to vector<4x256xf32>
    %c1_i32_43 = arith.constant 1 : i32
    %89 = tpu.dynamic_rotate %88 by %c1_i32_43 dim 1 : vector<4x256xf32>, i32 -> vector<4x256xf32>
    %c255_i32_44 = arith.constant 255 : i32
    %90 = tpu.dynamic_rotate %88 by %c255_i32_44 dim 1 : vector<4x256xf32>, i32 -> vector<4x256xf32>
    %91 = arith.select %4, %90, %89 : vector<4x256xi1>, vector<4x256xf32>
    %92 = arith.select %8, %89, %90 : vector<4x256xi1>, vector<4x256xf32>
    %c0_45 = arith.constant 0 : index
    %c0_46 = arith.constant 0 : index
    %c0_47 = arith.constant 0 : index
    %93 = vector.load %arg5[%c0_45, %c0_46, %c0_47] : memref<9x4x4xf32, #tpu.memory_space<vmem>>, vector<1x4x4xf32>
    %94 = vector.shape_cast %93 : vector<1x4x4xf32> to vector<4x4xf32>
    %cst_48 = arith.constant dense<0.000000e+00> : vector<4x256xf32>
    %95 = tpu.matmul %94, %91, %cst_48 {dimension_numbers = #tpu.dot_dimension_numbers<[1], [0], [0], [1], [0, 0, 1, 1], [], []>, precision = #tpu.contract_precision<fp32>} : vector<4x4xf32>, vector<4x256xf32>, vector<4x256xf32> -> vector<4x256xf32>
    %c1_49 = arith.constant 1 : index
    %c0_50 = arith.constant 0 : index
    %c0_51 = arith.constant 0 : index
    %96 = vector.load %arg5[%c1_49, %c0_50, %c0_51] : memref<9x4x4xf32, #tpu.memory_space<vmem>>, vector<1x4x4xf32>
    %97 = vector.shape_cast %96 : vector<1x4x4xf32> to vector<4x4xf32>
    %cst_52 = arith.constant dense<0.000000e+00> : vector<4x256xf32>
    %98 = tpu.matmul %97, %88, %cst_52 {dimension_numbers = #tpu.dot_dimension_numbers<[1], [0], [0], [1], [0, 0, 1, 1], [], []>, precision = #tpu.contract_precision<fp32>} : vector<4x4xf32>, vector<4x256xf32>, vector<4x256xf32> -> vector<4x256xf32>
    %99 = arith.addf %95, %98 : vector<4x256xf32>
    %c2_53 = arith.constant 2 : index
    %c0_54 = arith.constant 0 : index
    %c0_55 = arith.constant 0 : index
    %100 = vector.load %arg5[%c2_53, %c0_54, %c0_55] : memref<9x4x4xf32, #tpu.memory_space<vmem>>, vector<1x4x4xf32>
    %101 = vector.shape_cast %100 : vector<1x4x4xf32> to vector<4x4xf32>
    %cst_56 = arith.constant dense<0.000000e+00> : vector<4x256xf32>
    %102 = tpu.matmul %101, %92, %cst_56 {dimension_numbers = #tpu.dot_dimension_numbers<[1], [0], [0], [1], [0, 0, 1, 1], [], []>, precision = #tpu.contract_precision<fp32>} : vector<4x4xf32>, vector<4x256xf32>, vector<4x256xf32> -> vector<4x256xf32>
    %103 = arith.addf %99, %102 : vector<4x256xf32>
    %104 = vector.extract_strided_slice %87 {offsets = [0, 16], sizes = [4, 256], strides = [1, 1]} : vector<4x288xf32> to vector<4x256xf32>
    %c1_i32_57 = arith.constant 1 : i32
    %105 = tpu.dynamic_rotate %104 by %c1_i32_57 dim 1 : vector<4x256xf32>, i32 -> vector<4x256xf32>
    %c255_i32_58 = arith.constant 255 : i32
    %106 = tpu.dynamic_rotate %104 by %c255_i32_58 dim 1 : vector<4x256xf32>, i32 -> vector<4x256xf32>
    %107 = arith.select %4, %106, %105 : vector<4x256xi1>, vector<4x256xf32>
    %108 = arith.select %8, %105, %106 : vector<4x256xi1>, vector<4x256xf32>
    %c3_59 = arith.constant 3 : index
    %c0_60 = arith.constant 0 : index
    %c0_61 = arith.constant 0 : index
    %109 = vector.load %arg5[%c3_59, %c0_60, %c0_61] : memref<9x4x4xf32, #tpu.memory_space<vmem>>, vector<1x4x4xf32>
    %110 = vector.shape_cast %109 : vector<1x4x4xf32> to vector<4x4xf32>
    %cst_62 = arith.constant dense<0.000000e+00> : vector<4x256xf32>
    %111 = tpu.matmul %110, %107, %cst_62 {dimension_numbers = #tpu.dot_dimension_numbers<[1], [0], [0], [1], [0, 0, 1, 1], [], []>, precision = #tpu.contract_precision<fp32>} : vector<4x4xf32>, vector<4x256xf32>, vector<4x256xf32> -> vector<4x256xf32>
    %112 = arith.addf %103, %111 : vector<4x256xf32>
    %c4_63 = arith.constant 4 : index
    %c0_64 = arith.constant 0 : index
    %c0_65 = arith.constant 0 : index
    %113 = vector.load %arg5[%c4_63, %c0_64, %c0_65] : memref<9x4x4xf32, #tpu.memory_space<vmem>>, vector<1x4x4xf32>
    %114 = vector.shape_cast %113 : vector<1x4x4xf32> to vector<4x4xf32>
    %cst_66 = arith.constant dense<0.000000e+00> : vector<4x256xf32>
    %115 = tpu.matmul %114, %104, %cst_66 {dimension_numbers = #tpu.dot_dimension_numbers<[1], [0], [0], [1], [0, 0, 1, 1], [], []>, precision = #tpu.contract_precision<fp32>} : vector<4x4xf32>, vector<4x256xf32>, vector<4x256xf32> -> vector<4x256xf32>
    %116 = arith.addf %112, %115 : vector<4x256xf32>
    %c5_67 = arith.constant 5 : index
    %c0_68 = arith.constant 0 : index
    %c0_69 = arith.constant 0 : index
    %117 = vector.load %arg5[%c5_67, %c0_68, %c0_69] : memref<9x4x4xf32, #tpu.memory_space<vmem>>, vector<1x4x4xf32>
    %118 = vector.shape_cast %117 : vector<1x4x4xf32> to vector<4x4xf32>
    %cst_70 = arith.constant dense<0.000000e+00> : vector<4x256xf32>
    %119 = tpu.matmul %118, %108, %cst_70 {dimension_numbers = #tpu.dot_dimension_numbers<[1], [0], [0], [1], [0, 0, 1, 1], [], []>, precision = #tpu.contract_precision<fp32>} : vector<4x4xf32>, vector<4x256xf32>, vector<4x256xf32> -> vector<4x256xf32>
    %120 = arith.addf %116, %119 : vector<4x256xf32>
    %121 = vector.extract_strided_slice %87 {offsets = [0, 32], sizes = [4, 256], strides = [1, 1]} : vector<4x288xf32> to vector<4x256xf32>
    %c1_i32_71 = arith.constant 1 : i32
    %122 = tpu.dynamic_rotate %121 by %c1_i32_71 dim 1 : vector<4x256xf32>, i32 -> vector<4x256xf32>
    %c255_i32_72 = arith.constant 255 : i32
    %123 = tpu.dynamic_rotate %121 by %c255_i32_72 dim 1 : vector<4x256xf32>, i32 -> vector<4x256xf32>
    %124 = arith.select %4, %123, %122 : vector<4x256xi1>, vector<4x256xf32>
    %125 = arith.select %8, %122, %123 : vector<4x256xi1>, vector<4x256xf32>
    %c6_73 = arith.constant 6 : index
    %c0_74 = arith.constant 0 : index
    %c0_75 = arith.constant 0 : index
    %126 = vector.load %arg5[%c6_73, %c0_74, %c0_75] : memref<9x4x4xf32, #tpu.memory_space<vmem>>, vector<1x4x4xf32>
    %127 = vector.shape_cast %126 : vector<1x4x4xf32> to vector<4x4xf32>
    %cst_76 = arith.constant dense<0.000000e+00> : vector<4x256xf32>
    %128 = tpu.matmul %127, %124, %cst_76 {dimension_numbers = #tpu.dot_dimension_numbers<[1], [0], [0], [1], [0, 0, 1, 1], [], []>, precision = #tpu.contract_precision<fp32>} : vector<4x4xf32>, vector<4x256xf32>, vector<4x256xf32> -> vector<4x256xf32>
    %129 = arith.addf %120, %128 : vector<4x256xf32>
    %c7_77 = arith.constant 7 : index
    %c0_78 = arith.constant 0 : index
    %c0_79 = arith.constant 0 : index
    %130 = vector.load %arg5[%c7_77, %c0_78, %c0_79] : memref<9x4x4xf32, #tpu.memory_space<vmem>>, vector<1x4x4xf32>
    %131 = vector.shape_cast %130 : vector<1x4x4xf32> to vector<4x4xf32>
    %cst_80 = arith.constant dense<0.000000e+00> : vector<4x256xf32>
    %132 = tpu.matmul %131, %121, %cst_80 {dimension_numbers = #tpu.dot_dimension_numbers<[1], [0], [0], [1], [0, 0, 1, 1], [], []>, precision = #tpu.contract_precision<fp32>} : vector<4x4xf32>, vector<4x256xf32>, vector<4x256xf32> -> vector<4x256xf32>
    %133 = arith.addf %129, %132 : vector<4x256xf32>
    %c8_81 = arith.constant 8 : index
    %c0_82 = arith.constant 0 : index
    %c0_83 = arith.constant 0 : index
    %134 = vector.load %arg5[%c8_81, %c0_82, %c0_83] : memref<9x4x4xf32, #tpu.memory_space<vmem>>, vector<1x4x4xf32>
    %135 = vector.shape_cast %134 : vector<1x4x4xf32> to vector<4x4xf32>
    %cst_84 = arith.constant dense<0.000000e+00> : vector<4x256xf32>
    %136 = tpu.matmul %135, %125, %cst_84 {dimension_numbers = #tpu.dot_dimension_numbers<[1], [0], [0], [1], [0, 0, 1, 1], [], []>, precision = #tpu.contract_precision<fp32>} : vector<4x4xf32>, vector<4x256xf32>, vector<4x256xf32> -> vector<4x256xf32>
    %137 = arith.addf %133, %136 : vector<4x256xf32>
    %c0_85 = arith.constant 0 : index
    %c0_86 = arith.constant 0 : index
    %138 = vector.load %arg6[%c0_85, %c0_86] : memref<4x1xf32, #tpu.memory_space<vmem>>, vector<4x1xf32>
    %139 = vector.broadcast %138 : vector<4x1xf32> to vector<4x256xf32>
    %140 = arith.addf %137, %139 : vector<4x256xf32>
    %cst_87 = arith.constant dense<0.000000e+00> : vector<4xf32>
    %141 = vector.multi_reduction <add>, %140, %cst_87 [1] : vector<4x256xf32> to vector<4xf32>
    %142 = vector.shape_cast %141 : vector<4xf32> to vector<4x1xf32>
    %cst_88 = arith.constant 3.906250e-03 : f32
    %143 = vector.broadcast %cst_88 : f32 to vector<4x1xf32>
    %144 = arith.mulf %142, %143 : vector<4x1xf32>
    %145 = vector.broadcast %144 : vector<4x1xf32> to vector<4x256xf32>
    %146 = arith.subf %140, %145 : vector<4x256xf32>
    %147 = arith.mulf %146, %146 : vector<4x256xf32>
    %cst_89 = arith.constant dense<0.000000e+00> : vector<4xf32>
    %148 = vector.multi_reduction <add>, %147, %cst_89 [1] : vector<4x256xf32> to vector<4xf32>
    %149 = vector.shape_cast %148 : vector<4xf32> to vector<4x1xf32>
    %cst_90 = arith.constant 3.906250e-03 : f32
    %150 = vector.broadcast %cst_90 : f32 to vector<4x1xf32>
    %151 = arith.mulf %149, %150 : vector<4x1xf32>
    %cst_91 = arith.constant 9.99999974E-6 : f32
    %152 = vector.broadcast %cst_91 : f32 to vector<4x1xf32>
    %153 = arith.addf %151, %152 : vector<4x1xf32>
    %154 = math.rsqrt %153 : vector<4x1xf32>
    %155 = vector.broadcast %154 : vector<4x1xf32> to vector<4x256xf32>
    %156 = arith.mulf %146, %155 : vector<4x256xf32>
    %c0_92 = arith.constant 0 : index
    %c0_93 = arith.constant 0 : index
    %c0_94 = arith.constant 0 : index
    %157 = vector.load %arg1[%c0_92, %c0_93, %c0_94] : memref<1x4x256xf32, #tpu.memory_space<vmem>>, vector<1x4x256xf32>
    %158 = vector.shape_cast %157 : vector<1x4x256xf32> to vector<4x256xf32>
    %159 = arith.addf %158, %156 : vector<4x256xf32>
    %c0_95 = arith.constant 0 : index
    %c0_96 = arith.constant 0 : index
    %c0_97 = arith.constant 0 : index
    %160 = vector.load %arg7[%c0_95, %c0_96, %c0_97] : memref<1x4x256xf32, #tpu.memory_space<vmem>>, vector<1x4x256xf32>
    %161 = vector.shape_cast %160 : vector<1x4x256xf32> to vector<4x256xf32>
    %162 = vector.shape_cast %159 : vector<4x256xf32> to vector<1x4x256xf32>
    tpu.vector_store %arg7[%c0_95, %c0_96, %c0_97], %162 {strides = array<i32>} : memref<1x4x256xf32, #tpu.memory_space<vmem>>, vector<1x4x256xf32>,
    return
  }
  func.func @transform_0(%arg0: i32) -> (i32, i32, i32) {
    %c0_i32 = arith.constant 0 : i32
    %c0_i32_0 = arith.constant 0 : i32
    %c0_i32_1 = arith.constant 0 : i32
    return %arg0, %c0_i32, %c0_i32_0 : i32, i32, i32
  }
  func.func @transform_1(%arg0: i32) -> (i32, i32) {
    %c0_i32 = arith.constant 0 : i32
    %c0_i32_0 = arith.constant 0 : i32
    %c0_i32_1 = arith.constant 0 : i32
    return %c0_i32, %c0_i32_0 : i32, i32
  }
  func.func @transform_2(%arg0: i32) -> (i32, i32, i32) {
    %c0_i32 = arith.constant 0 : i32
    %c0_i32_0 = arith.constant 0 : i32
    %c0_i32_1 = arith.constant 0 : i32
    %c0_i32_2 = arith.constant 0 : i32
    return %c0_i32, %c0_i32_0, %c0_i32_1 : i32, i32, i32
  }
  func.func @transform_3(%arg0: i32) -> (i32, i32) {
    %c0_i32 = arith.constant 0 : i32
    %c0_i32_0 = arith.constant 0 : i32
    %c0_i32_1 = arith.constant 0 : i32
    return %c0_i32, %c0_i32_0 : i32, i32
  }
  func.func @transform_4(%arg0: i32) -> (i32, i32, i32) {
    %c0_i32 = arith.constant 0 : i32
    %c0_i32_0 = arith.constant 0 : i32
    %c0_i32_1 = arith.constant 0 : i32
    %c0_i32_2 = arith.constant 0 : i32
    return %c0_i32, %c0_i32_0, %c0_i32_1 : i32, i32, i32
  }
  func.func @transform_5(%arg0: i32) -> (i32, i32) {
    %c0_i32 = arith.constant 0 : i32
    %c0_i32_0 = arith.constant 0 : i32
    %c0_i32_1 = arith.constant 0 : i32
    return %c0_i32, %c0_i32_0 : i32, i32
  }
  func.func @transform_6(%arg0: i32) -> (i32, i32, i32) {
    %c0_i32 = arith.constant 0 : i32
    %c0_i32_0 = arith.constant 0 : i32
    %c0_i32_1 = arith.constant 0 : i32
    return %arg0, %c0_i32, %c0_i32_0 : i32, i32, i32
  }
}

</mosaic_0001>

<bundles_post_ra>
// kernel: tpu_custom_call.1
= control target key start
LH: loop header
LB: loop body
LE: loop exit
PB: predicated region body
PF: predicated region fallthrough
CT: control target
= control target key end

     0   :  { %11 = vsyncpa [#allocation3], 0  ;;  %s10248_s0 = inlined_call_operand.vmem [shape: f32[2,4,256], index: 0, kind: input, shape index: {}]   ;;  %s10249_s1 = inlined_call_operand.vmem [shape: s32[1,256], index: 1, kind: input, shape index: {}]   ;;  %s10250_s2 = inlined_call_operand.vmem [shape: f32[9,4,4], index: 2, kind: input, shape index: {}]   ;;  %s10251_s3 = inlined_call_operand.vmem [shape: f32[4,1], index: 3, kind: input, shape index: {}]   ;;  %s10252_s4 = inlined_call_operand.vmem [shape: f32[9,4,4], index: 4, kind: input, shape index: {}]   ;;  %s10253_s5 = inlined_call_operand.vmem [shape: f32[4,1], index: 5, kind: input, shape index: {}]   ;;  %s10254_s6 = inlined_call_operand.hbm [shape: f32[2,4,256], index: 6, kind: output, shape index: {}]  }
   0x1   :  { %13 = vsyncpa [#allocation3 + $0x1], 0  ;;  %s9585_s21 = smov 0   ;;  %s9587_s22 = smov 0  }
   0x2   :  { %s9589_s23 = smov 0   ;;  %s9591_s24 = smov 0  }
   0x3 LB: > { %s9606_s25 = sadd.s32 4294967295, %s9539_s24   ;;  %s9181_s26 = sadd.s32 4294967294, %s9539_s24   ;;  %s9539_s24 = sphi %s9591_s24, %s10260_s24   ;;  %s9535_s23 = sphi %s9589_s23, %s10259_s23   ;;  %s9531_s22 = sphi %s9587_s22, %s10258_s22   ;;  %s9527_s21 = sphi %s9585_s21, %s10257_s21  }
   0x4   : > { %s9610_s27 = sadd.s32 1, %s9539_s24   ;;  %s157_s28 = sadd.s32 1, %s9535_s23 }
   0x5   : > { %s154_s29 = ssub.s32 %s9539_s24, %s9610_s27  ;;  %p167_p0 = scmp.ne.s32.totalorder %s9535_s23, %s9531_s22 }
   0x6   : > { %p155_p1 = scmp.eq.s32.totalorder %s154_s29, 0  ;;  %p168_p2 = scmp.eq.s32.totalorder %s9606_s25, 1 }
   0x7   : > { %p173_p3 = scmp.ne.s32.totalorder %s9531_s22, %s9527_s21  ;;  %p174_p4 = scmp.eq.s32.totalorder %s9181_s26, 1 }
   0x8   : > { %s9621_s30 = scalar_select %p155_p1, %s9535_s23, %s157_s28  }
   0x9   : > { %p9623_p5 = por %p168_p2, %p167_p0  ;;  %p9627_p6 = por %p174_p4, %p173_p3 }
   0xa   : > { %p9184_p7 = scmp.ge.s32.totalorder %s9539_s24, 1  ;;  %p215_p8 = scmp.lt.s32.totalorder %s9539_s24, 3 }
   0xc   : > { %p216_p9 = pnand %p9184_p7, %p215_p8 }
   0xd   : > { %p245_p10 = scmp.lt.s32.totalorder (!%p216_p9), %s9606_s25, 1  ;;  %v9541_v0 = vmov (!%p216_p9), 0.0   ;;  %s9542_s14 = smov (!%p216_p9), 112   ;;  %v9188_v3 = vld [vmem:[%s10250_s2 + $0x4] sm:$0xf] (!%p216_p9)  ;;  %vm318_vm0 = vcmask (!%p216_p9), 31744   ;;  %v253_v31 = vlaneseq (!%p216_p9) }
   0xe   : > { %219 = sbr.rel (%p216_p9) target bundleno = 2407 (0x967), region = 44  ;;  %394 = vmatprep.mubr.f32.mxu0 (!%p216_p9), %v9541_v0  ;;  %4805 = vmatprep.mubr.f32.mxu1 (!%p216_p9), %v9541_v0  ;;  %s9543_s15 = smov (!%p216_p9), 16   ;;  %v320_v4 = vsel (!%p216_p9), %vm318_vm0, %v9188_v3, 0  ;;  %v9545_v7 = vmov (!%p216_p9), 0   ;;  %vm285_vm1 = vcmask (!%p216_p9), 130048   ;;  %vm322_vm2 = vcmask (!%p216_p9), 1043456  }
   0xf   : > { %s9544_s16 = smov (!%p216_p9), 48   ;;  %v395_v5 = vand.u32 (!%p216_p9), 4294901760, %v320_v4  ;;  %9470 = vset.pattern.permute.xlu0 (!%p216_p9), %v9545_v7  ;;  %s9546_s19 = smov (!%p216_p9), 1   ;;  %v315_v30 = vld [vmem:[%s10250_s2] sm:$0xf] (!%p216_p9)  ;;  %v9692_v34 = vshrl.u32 (!%p216_p9), %v253_v31, 7 }
  0x10   : > { %s9547_s20 = smov (!%p216_p9), 127   ;;  %v794_v32 = vsel (!%p216_p9), %vm318_vm0, %v315_v30, 0  ;;  %v250_v33 = vld [vmem:[%s10249_s1] sm:$0x3] (!%p216_p9)  ;;  %v9702_v40 = vand.u32 (!%p216_p9), 127, %v253_v31  ;;  %vm1752_vm8 = vcmask (!%p216_p9), 916480  }
  0x11   : > { %v396_v6 = vsub.f32 (!%p216_p9), %v320_v4, %v395_v5  ;;  %v9694_v35 = vand.u32 (!%p216_p9), 4294901760, %v794_v32  ;;  %vm251_vm3 = vcmp.eq.s32.totalorder (!%p216_p9), %v250_v33, 0  ;;  %v255_v36 = vsub.s32 (!%p216_p9), 0, %v9692_v34  ;;  %s9210_s26 = sshll.u32 (!%p216_p9), %s9606_s25, 7 }
  0x12   : > { %v259_v37 = vsub.s32 (!%p216_p9), 1, %v9692_v34  ;;  %v252_v38 = vsel (!%p216_p9), %vm251_vm3, 1, %v9545_v7  ;;  %vm301_vm4 = vcmp.lt.s32.totalorder (!%p216_p9), %v9702_v40, 1  ;;  %vm308_vm5 = vcmp.lt.s32.totalorder (!%p216_p9), %v9702_v40, 127  ;;  %v9190_v34 = vld [vmem:[%s10250_s2 + $0xc] sm:$0xf] (!%p216_p9) }
  0x13   : > { %v397_v9 = vand.u32 (!%p216_p9), 4294901760, %v396_v6  ;;  %v9700_v39 = vsub.f32 (!%p216_p9), %v794_v32, %v9694_v35  ;;  %v9706_v41 = vrot.slane (!%p216_p9), %v252_v38, %v255_v36  ;;  %vm263_vm9 = vcmp.eq.s32.totalorder (!%p216_p9), %v250_v33, 15 }
  0x14   : > { %v9708_v42 = vrot.slane (!%p216_p9), %v252_v38, %v259_v37  ;;  %vm3211_vm12 = vcmask (!%p216_p9), 785408  }
  0x15   : > { %s246_s9 = scalar_select %p245_p10, %s9606_s25, 1  ;;  %v398_v12 = vsub.f32 %v396_v6, %v397_v9  ;;  %v871_v45 = vand.u32 4294901760, %v9700_v39  ;;  %vm261_vm6 = vcmp.eq.s32.totalorder %v9706_v41, 1 }
  0x16   : > { %vm262_vm7 = vcmp.eq.s32.totalorder %v9708_v42, 1  ;;  %s9549_s25 = smov [#allocation2]  }
  0x17   : > { %s9209_s10 = sshll.u32 %s246_s9, 3  ;;  %v399_v19 = vand.u32 4294901760, %v398_v12  ;;  %v872_v48 = vsub.f32 %v9700_v39, %v871_v45  ;;  %s10206_s9 = scalar_lea.hbm %s10254_s6, %s9210_s26 }
  0x18   : > { %s9640_s13 = scalar_lea.vmem %s10248_s0, %s9209_s10  ;;  %s9548_s10 = smov 96  }
  0x19   : > { %v275_v1 = vld [vmem:[%s9640_s13] sm:$0xff]  ;;  %v873_v61 = vand.u32 4294901760, %v872_v48 }
  0x1a   : > { %277 = vrot.lane.b32.xlu0 %v275_v1, %s9542_s14  ;;  %v280_v2 = vcombine.high %v275_v1, %v275_v1 }
  0x1c   : > { %283 = vrot.lane.b32.xlu1 %v280_v2, %s9543_s15 }
  0x1e   : > { %281 = vrot.lane.b32.xlu0 %v275_v1, %s9543_s15 }
  0x20   : > { %290 = vrot.lane.b32.xlu1 %v280_v2, %s9544_s16 }
  0x8c   : > { %v278_v8 = vpop.permute.xlu0 %277 }
  0x8e   : > { %v284_v10 = vpop.permute.xlu1 %283 }
  0x90   : > { %v282_v11 = vpop.permute.xlu0 %281 }
  0x91   : > { %v9653_v13 = vsel %vm285_vm1, %v278_v8, %v282_v11  ;;  %v9656_v14 = vsel %vm285_vm1, %v282_v11, %v284_v10  ;;  %v264_v11 = vsel %vm263_vm9, 1, %v9545_v7 }
  0x92   : > { %v324_v15 = vsel %vm322_vm2, %v9653_v13, 0  ;;  %v326_v16 = vsel %vm322_vm2, %v9656_v14, 0  ;;  %295 = vrot.lane.b32.xlu0 %v9653_v13, %s9546_s19  ;;  %297 = vrot.lane.b32.xlu1 %v9656_v14, %s9546_s19  ;;  %v291_v26 = vpop.permute.xlu1 %290  ;;  %v9754_v12 = vrot.slane %v264_v11, %v259_v37  ;;  %v9763_v7 = vrot.slane %v264_v11, %v255_v36 }
  0x93   : > { %v328_v17 = vand.u32 4294901760, %v326_v16  ;;  %v330_v18 = vand.u32 4294901760, %v324_v15  ;;  %v9676_v29 = vsel %vm285_vm1, %v284_v10, %v291_v26 }
  0x94   : > { %vm274_vm10 = vcmp.eq.s32.totalorder %v9754_v12, 1  ;;  %vm273_vm11 = vcmp.eq.s32.totalorder %v9763_v7, 1 }
  0x95   : > { %329 = vmatprep.subr.mxu0 %v328_v17  ;;  %v407_v20 = vsub.f32 %v326_v16, %v328_v17  ;;  %v413_v21 = vsub.f32 %v324_v15, %v330_v18  ;;  %v9189_v15 = vld [vmem:[%s10250_s2 + $0x8] sm:$0xf] }
  0x96   : > { %304 = vrot.lane.b32.xlu0 %v9653_v13, %s9547_s20  ;;  %306 = vrot.lane.b32.xlu1 %v9656_v14, %s9547_s20 }
  0x97   : > { %331 = vmatpush1.msra.mxu0 %v330_v18  ;;  %v408_v22 = vand.u32 4294901760, %v407_v20  ;;  %v414_v23 = vand.u32 4294901760, %v413_v21 }
  0x98   : > { %400 = vmatmul.mubr.f32.vlgmr.msra.gmra.mrb[0].mxu0 %v399_v19 }
  0x99   : > { %v409_v24 = vsub.f32 %v407_v20, %v408_v22  ;;  %v415_v25 = vsub.f32 %v413_v21, %v414_v23  ;;  %480 = vmatprep.mubr.f32.mxu0 %v9541_v0 }
  0x9a   : > { %1746 = vrot.lane.b32.xlu0 %v9653_v13, %s9542_s14  ;;  %1748 = vrot.lane.b32.xlu1 %v9656_v14, %s9542_s14 }
  0x9b   : > { %v410_v27 = vand.u32 4294901760, %v409_v24  ;;  %v416_v28 = vand.u32 4294901760, %v415_v25 }
  0x9d   : > { %411 = vmatprep.subr.mxu0 %v410_v27 }
  0x9e   : > { %417 = vmatpush1.msra.mxu0 %v416_v28  ;;  %1750 = vrot.lane.b32.xlu0 %v9676_v29, %s9542_s14 }
  0x9f   : > { %490 = vmatprep.subr.mxu0 %v407_v20 }
  0xa0   : > { %482 = vmatmul.mubr.f32.vlgmr.msra.gmra.mrb[0].mxu0 %v395_v5 }
  0xa1   : > { %493 = vmatpush1.msra.mxu0 %v413_v21  ;;  %556 = vmatprep.mubr.f32.mxu0 %v9541_v0 }
  0xa2   : > { %566 = vmatprep.subr.mxu0 %v328_v17 }
  0xa8   : > { %559 = vmatmul.mubr.f32.vlgmr.msra.gmra.mrb[0].mxu0 %v396_v6 }
  0xa9   : > { %568 = vmatpush1.msra.mxu0 %v330_v18  ;;  %631 = vmatprep.mubr.f32.mxu0 %v9541_v0 }
  0xaa   : > { %644 = vmatprep.subr.mxu0 %v408_v22 }
  0xb0   : > { %635 = vmatmul.mubr.f32.vlgmr.msra.gmra.mrb[0].mxu0 %v397_v9 }
  0xb1   : > { %648 = vmatpush1.msra.mxu0 %v414_v23  ;;  %711 = vmatprep.mubr.f32.mxu0 %v9541_v0 }
  0xb2   : > { %720 = vmatprep.subr.mxu0 %v328_v17 }
  0xb8   : > { %713 = vmatmul.mubr.f32.vlgmr.msra.gmra.mrb[0].mxu0 %v395_v5 }
  0xb9   : > { %722 = vmatpush1.msra.mxu0 %v330_v18  ;;  %785 = vmatprep.mubr.f32.mxu0 %v9541_v0  ;;  %v1270_v18 = vsel %vm318_vm0, %v9189_v15, 0  ;;  %v9191_v15 = vld [vmem:[%s10250_s2 + $0x10] sm:$0xf] }
  0xba   : > { %v1345_v21 = vand.u32 4294901760, %v1270_v18 }
  0xbc   : > { %v1346_v24 = vsub.f32 %v1270_v18, %v1345_v21 }
  0xbe   : > { %v1347_v27 = vand.u32 4294901760, %v1346_v24 }
  0xc0   : > { %787 = vmatmul.mubr.f32.vlgmr.msra.gmra.mrb[0].mxu0 %v395_v5  ;;  %v1348_v30 = vsub.f32 %v1346_v24, %v1347_v27 }
  0xc1   : > { %868 = vmatprep.mubr.f32.mxu0 %v9541_v0 }
  0xc2   : > { %v1349_v32 = vand.u32 4294901760, %v1348_v30 }
 0x104   : > { %v296_v43 = vpop.permute.xlu0 %295  ;;  %v298_v44 = vpop.permute.xlu1 %297 }
 0x105   : > { %v302_v49 = vsel %vm301_vm4, %v296_v43, %v298_v44  ;;  %v303_v50 = vsel %vm301_vm4, %v298_v44, %v296_v43 }
 0x108   : > { %v305_v46 = vpop.permute.xlu0 %304  ;;  %v307_v47 = vpop.permute.xlu1 %306 }
 0x109   : > { %v309_v51 = vsel %vm308_vm5, %v305_v46, %v307_v47  ;;  %v310_v52 = vsel %vm308_vm5, %v307_v47, %v305_v46 }
 0x10a   : > { %v311_v53 = vsel %vm261_vm6, %v309_v51, %v303_v50  ;;  %v312_v54 = vsel %vm262_vm7, %v310_v52, %v302_v49  ;;  %v313_v17 = vsel %vm273_vm11, %v303_v50, %v309_v51 }
 0x10b   : > { %v797_v55 = vsel %vm322_vm2, %v311_v53, 0  ;;  %v800_v56 = vsel %vm322_vm2, %v312_v54, 0  ;;  %v1273_v19 = vsel %vm322_vm2, %v313_v17, 0  ;;  %v2254_v17 = vsel %vm318_vm0, %v9191_v15, 0 }
 0x10c   : > { %v802_v57 = vand.u32 4294901760, %v800_v56  ;;  %v804_v58 = vand.u32 4294901760, %v797_v55  ;;  %v1747_v59 = vpop.permute.xlu0 %1746  ;;  %v1749_v60 = vpop.permute.xlu1 %1748  ;;  %v1280_v22 = vand.u32 4294901760, %v1273_v19 }
 0x10d   : > { %v9733_v62 = vsel %vm1752_vm8, %v1747_v59, %v1749_v60 }
 0x10e   : > { %v881_v63 = vsub.f32 %v800_v56, %v802_v57  ;;  %v887_v1 = vsub.f32 %v797_v55, %v804_v58  ;;  %803 = vmatprep.subr.mxu0 %v802_v57  ;;  %1757 = vrot.lane.b32.xlu1 %v9733_v62, %s9546_s19  ;;  %v1363_v25 = vsub.f32 %v1273_v19, %v1280_v22  ;;  %v2256_v18 = vsel %vm322_vm2, %v9733_v62, 0 }
 0x10f   : > { %805 = vmatpush1.msra.mxu0 %v804_v58 }
 0x110   : > { %v1751_v2 = vpop.permute.xlu0 %1750  ;;  %874 = vmatmul.mubr.f32.vlgmr.msra.gmra.mrb[0].mxu0 %v873_v61  ;;  %v882_v3 = vand.u32 4294901760, %v881_v63  ;;  %v888_v4 = vand.u32 4294901760, %v887_v1  ;;  %v1364_v28 = vand.u32 4294901760, %v1363_v25 }
 0x111   : > { %v9738_v5 = vsel %vm1752_vm8, %v1749_v60, %v1751_v2  ;;  %954 = vmatprep.mubr.f32.mxu0 %v9541_v0 }
 0x112   : > { %1759 = vrot.lane.b32.xlu0 %v9738_v5, %s9546_s19  ;;  %v883_v6 = vsub.f32 %v881_v63, %v882_v3  ;;  %v889_v8 = vsub.f32 %v887_v1, %v888_v4  ;;  %1763 = vrot.lane.b32.xlu1 %v9733_v62, %s9547_s20  ;;  %v1365_v31 = vsub.f32 %v1363_v25, %v1364_v28 }
 0x114   : > { %v884_v9 = vand.u32 4294901760, %v883_v6  ;;  %v890_v10 = vand.u32 4294901760, %v889_v8  ;;  %v1366_v33 = vand.u32 4294901760, %v1365_v31 }
 0x116   : > { %885 = vmatprep.subr.mxu0 %v884_v9  ;;  %1765 = vrot.lane.b32.xlu0 %v9738_v5, %s9547_s20 }
 0x117   : > { %3205 = vrot.lane.b32.xlu1 %v9653_v13, %s9548_s10  ;;  %891 = vmatpush1.msra.mxu0 %v890_v10  ;;  %v314_v13 = vsel %vm274_vm10, %v302_v49, %v310_v52 }
 0x118   : > { %956 = vmatmul.mubr.f32.vlgmr.msra.gmra.mrb[0].mxu0 %v9694_v35  ;;  %964 = vmatprep.subr.mxu0 %v881_v63 }
 0x119   : > { %967 = vmatpush1.msra.mxu0 %v887_v1  ;;  %1030 = vmatprep.mubr.f32.mxu0 %v9541_v0 }
 0x11a   : > { %1040 = vmatprep.subr.mxu0 %v802_v57  ;;  %3207 = vrot.lane.b32.xlu0 %v9656_v14, %s9548_s10  ;;  %v1276_v14 = vsel %vm322_vm2, %v314_v13, 0 }
 0x11b   : > { %3209 = vrot.lane.b32.xlu1 %v9676_v29, %s9548_s10  ;;  %v1278_v16 = vand.u32 4294901760, %v1276_v14 }
 0x11d   : > { %v1357_v20 = vsub.f32 %v1276_v14, %v1278_v16  ;;  %v2258_v14 = vsel %vm322_vm2, %v9738_v5, 0 }
 0x11f   : > { %v1358_v23 = vand.u32 4294901760, %v1357_v20 }
 0x120   : > { %1033 = vmatmul.mubr.f32.vlgmr.msra.gmra.mrb[0].mxu0 %v9700_v39 }
 0x121   : > { %1042 = vmatpush1.msra.mxu0 %v804_v58  ;;  %1105 = vmatprep.mubr.f32.mxu0 %v9541_v0  ;;  %v1359_v26 = vsub.f32 %v1357_v20, %v1358_v23 }
 0x122   : > { %1118 = vmatprep.subr.mxu0 %v882_v3 }
 0x123   : > { %v1360_v29 = vand.u32 4294901760, %v1359_v26 }
 0x128   : > { %1109 = vmatmul.mubr.f32.vlgmr.msra.gmra.mrb[0].mxu0 %v871_v45 }
 0x129   : > { %1122 = vmatpush1.msra.mxu0 %v888_v4  ;;  %1185 = vmatprep.mubr.f32.mxu0 %v9541_v0 }
 0x12a   : > { %1194 = vmatprep.subr.mxu0 %v802_v57 }
 0x130   : > { %1187 = vmatmul.mubr.f32.vlgmr.msra.gmra.mrb[0].mxu0 %v9694_v35 }
 0x131   : > { %1196 = vmatpush1.msra.mxu0 %v804_v58  ;;  %1259 = vmatprep.mubr.f32.mxu0 %v9541_v0 }
 0x132   : > { %1279 = vmatprep.subr.mxu0 %v1278_v16 }
 0x138   : > { %1261 = vmatmul.mubr.f32.vlgmr.msra.gmra.mrb[0].mxu0 %v9694_v35  ;;  %v1776_v35 = vsel %vm318_vm0, %v9190_v34, 0 }
 0x139   : > { %1281 = vmatpush1.msra.mxu0 %v1280_v22  ;;  %1344 = vmatprep.mubr.f32.mxu0 %v9541_v0  ;;  %v9793_v36 = vand.u32 4294901760, %v1776_v35 }
 0x13a   : > { %1361 = vmatprep.subr.mxu0 %v1360_v29 }
 0x13b   : > { %v1852_v37 = vsub.f32 %v1776_v35, %v9793_v36 }
 0x13d   : > { %v1853_v43 = vand.u32 4294901760, %v1852_v37 }
 0x13f   : > { %v1854_v46 = vsub.f32 %v1852_v37, %v1853_v43 }
 0x140   : > { %1350 = vmatmul.mubr.f32.vlgmr.msra.gmra.mrb[0].mxu0 %v1349_v32  ;;  %v9192_v32 = vld [vmem:[%s10250_s2 + $0x14] sm:$0xf] }
 0x141   : > { %1367 = vmatpush1.msra.mxu0 %v1366_v33  ;;  %1430 = vmatprep.mubr.f32.mxu0 %v9541_v0  ;;  %v1855_v61 = vand.u32 4294901760, %v1854_v46  ;;  %v2730_v34 = vsel %vm318_vm0, %v9192_v32, 0 }
 0x142   : > { %1440 = vmatprep.subr.mxu0 %v1357_v20  ;;  %v2327_v20 = vand.u32 4294901760, %v2254_v17 }
 0x148   : > { %1432 = vmatmul.mubr.f32.vlgmr.msra.gmra.mrb[0].mxu0 %v1345_v21 }
 0x149   : > { %1443 = vmatpush1.msra.mxu0 %v1363_v25  ;;  %1506 = vmatprep.mubr.f32.mxu0 %v9541_v0 }
 0x14a   : > { %1516 = vmatprep.subr.mxu0 %v1278_v16 }
 0x150   : > { %1509 = vmatmul.mubr.f32.vlgmr.msra.gmra.mrb[0].mxu0 %v1346_v24 }
 0x151   : > { %1518 = vmatpush1.msra.mxu0 %v1280_v22  ;;  %1581 = vmatprep.mubr.f32.mxu0 %v9541_v0 }
 0x152   : > { %1594 = vmatprep.subr.mxu0 %v1358_v23 }
 0x158   : > { %1585 = vmatmul.mubr.f32.vlgmr.msra.gmra.mrb[0].mxu0 %v1347_v27 }
 0x159   : > { %1598 = vmatpush1.msra.mxu0 %v1364_v28  ;;  %1661 = vmatprep.mubr.f32.mxu0 %v9541_v0 }
 0x15a   : > { %1670 = vmatprep.subr.mxu0 %v1278_v16  ;;  %v2260_v16 = vand.u32 4294901760, %v2258_v14 }
 0x15c   : > { %v2339_v19 = vsub.f32 %v2258_v14, %v2260_v16 }
 0x15e   : > { %v2340_v5 = vand.u32 4294901760, %v2339_v19 }
 0x160   : > { %1663 = vmatmul.mubr.f32.vlgmr.msra.gmra.mrb[0].mxu0 %v1345_v21  ;;  %v2341_v24 = vsub.f32 %v2339_v19, %v2340_v5 }
 0x161   : > { %1672 = vmatpush1.msra.mxu0 %v1280_v22  ;;  %1735 = vmatprep.mubr.f32.mxu0 %v9541_v0  ;;  %v2328_v22 = vsub.f32 %v2254_v17, %v2327_v20 }
 0x162   : > { %v2342_v27 = vand.u32 4294901760, %v2341_v24 }
 0x163   : > { %v2329_v25 = vand.u32 4294901760, %v2328_v22 }
 0x165   : > { %v2330_v28 = vsub.f32 %v2328_v22, %v2329_v25 }
 0x167   : > { %v2331_v29 = vand.u32 4294901760, %v2330_v28  ;;  %v9194_v28 = vld [vmem:[%s10250_s2 + $0x1c] sm:$0xf] }
 0x168   : > { %1737 = vmatmul.mubr.f32.vlgmr.msra.gmra.mrb[0].mxu0 %v1345_v21  ;;  %v2262_v21 = vand.u32 4294901760, %v2256_v18 }
 0x169   : > { %1850 = vmatprep.mubr.f32.mxu0 %v9541_v0 }
 0x16a   : > { %v2345_v23 = vsub.f32 %v2256_v18, %v2262_v21 }
 0x16c   : > { %v2346_v26 = vand.u32 4294901760, %v2345_v23 }
 0x16e   : > { %v2347_v62 = vsub.f32 %v2345_v23, %v2346_v26 }
 0x170   : > { %v2348_v30 = vand.u32 4294901760, %v2347_v62 }
 0x180   : > { %v1758_v38 = vpop.permute.xlu1 %1757 }
 0x184   : > { %v1760_v39 = vpop.permute.xlu0 %1759  ;;  %v1764_v44 = vpop.permute.xlu1 %1763 }
 0x185   : > { %v1761_v47 = vsel %vm301_vm4, %v1758_v38, %v1760_v39  ;;  %v1762_v48 = vsel %vm301_vm4, %v1760_v39, %v1758_v38 }
 0x188   : > { %v1766_v45 = vpop.permute.xlu0 %1765 }
 0x189   : > { %v1767_v49 = vsel %vm308_vm5, %v1764_v44, %v1766_v45  ;;  %v1768_v50 = vsel %vm308_vm5, %v1766_v45, %v1764_v44  ;;  %v3206_v51 = vpop.permute.xlu1 %3205 }
 0x18a   : > { %v1769_v52 = vsel %vm261_vm6, %v1767_v49, %v1762_v48  ;;  %v1770_v53 = vsel %vm262_vm7, %v1768_v50, %v1761_v47  ;;  %v9810_v54 = vsel %vm273_vm11, %v1762_v48, %v1767_v49  ;;  %v9814_v55 = vsel %vm274_vm10, %v1761_v47, %v1768_v50 }
 0x18b   : > { %v1779_v56 = vsel %vm322_vm2, %v1769_v52, 0  ;;  %v1782_v57 = vsel %vm322_vm2, %v1770_v53, 0  ;;  %v2736_v31 = vsel %vm322_vm2, %v9814_v55, 0  ;;  %v2733_v35 = vsel %vm322_vm2, %v9810_v54, 0 }
 0x18c   : > { %v1784_v58 = vand.u32 4294901760, %v1782_v57  ;;  %v1786_v59 = vand.u32 4294901760, %v1779_v56  ;;  %v3208_v60 = vpop.permute.xlu0 %3207  ;;  %v2738_v33 = vand.u32 4294901760, %v2736_v31  ;;  %v2740_v38 = vand.u32 4294901760, %v2733_v35 }
 0x18d   : > { %v3210_v63 = vpop.permute.xlu1 %3209  ;;  %v9819_v1 = vsel %vm3211_vm12, %v3206_v51, %v3208_v60 }
 0x18e   : > { %v1863_v2 = vsub.f32 %v1782_v57, %v1784_v58  ;;  %v1869_v3 = vsub.f32 %v1779_v56, %v1786_v59  ;;  %1785 = vmatprep.subr.mxu0 %v1784_v58  ;;  %3216 = vrot.lane.b32.xlu0 %v9819_v1, %s9546_s19  ;;  %v9824_v4 = vsel %vm3211_vm12, %v3208_v60, %v3210_v63  ;;  %v9193_v57 = vld [vmem:[%s10250_s2 + $0x18] sm:$0xf] }
 0x18f   : > { %1787 = vmatpush1.msra.mxu0 %v1786_v59  ;;  %3218 = vrot.lane.b32.xlu1 %v9824_v4, %s9546_s19  ;;  %v2823_v44 = vsub.f32 %v2733_v35, %v2740_v38 }
 0x190   : > { %1856 = vmatmul.mubr.f32.vlgmr.msra.gmra.mrb[0].mxu0 %v1855_v61  ;;  %v1864_v6 = vand.u32 4294901760, %v1863_v2  ;;  %v1870_v8 = vand.u32 4294901760, %v1869_v3 }
 0x191   : > { %1936 = vmatprep.mubr.f32.mxu0 %v9541_v0  ;;  %v2824_v47 = vand.u32 4294901760, %v2823_v44 }
 0x192   : > { %v1865_v9 = vsub.f32 %v1863_v2, %v1864_v6  ;;  %v1871_v10 = vsub.f32 %v1869_v3, %v1870_v8  ;;  %3222 = vrot.lane.b32.xlu0 %v9819_v1, %s9547_s20 }
 0x193   : > { %3224 = vrot.lane.b32.xlu1 %v9824_v4, %s9547_s20  ;;  %v2825_v50 = vsub.f32 %v2823_v44, %v2824_v47 }
 0x194   : > { %v1866_v11 = vand.u32 4294901760, %v1865_v9  ;;  %v1872_v13 = vand.u32 4294901760, %v1871_v10  ;;  %v3235_v9 = vsel %vm318_vm0, %v9193_v57, 0 }
 0x195   : > { %v2826_v52 = vand.u32 4294901760, %v2825_v50  ;;  %v3310_v14 = vand.u32 4294901760, %v3235_v9 }
 0x196   : > { %1867 = vmatprep.subr.mxu0 %v1866_v11 }
 0x197   : > { %1873 = vmatpush1.msra.mxu0 %v1872_v13  ;;  %v3311_v17 = vsub.f32 %v3235_v9, %v3310_v14 }
 0x198   : > { %1938 = vmatmul.mubr.f32.vlgmr.msra.gmra.mrb[0].mxu0 %v9793_v36  ;;  %1946 = vmatprep.subr.mxu0 %v1863_v2 }
 0x199   : > { %1949 = vmatpush1.msra.mxu0 %v1869_v3  ;;  %2012 = vmatprep.mubr.f32.mxu0 %v9541_v0 }
 0x19a   : > { %2022 = vmatprep.subr.mxu0 %v1784_v58 }
 0x1a0   : > { %2015 = vmatmul.mubr.f32.vlgmr.msra.gmra.mrb[0].mxu0 %v1852_v37  ;;  %v9861_v37 = vand.u32 4294901760, %v2730_v34 }
 0x1a1   : > { %2024 = vmatpush1.msra.mxu0 %v1786_v59  ;;  %2087 = vmatprep.mubr.f32.mxu0 %v9541_v0 }
 0x1a2   : > { %2100 = vmatprep.subr.mxu0 %v1864_v6 }
 0x1a8   : > { %2091 = vmatmul.mubr.f32.vlgmr.msra.gmra.mrb[0].mxu0 %v1853_v43  ;;  %v2806_v43 = vsub.f32 %v2730_v34, %v9861_v37 }
 0x1a9   : > { %2104 = vmatpush1.msra.mxu0 %v1870_v8  ;;  %2167 = vmatprep.mubr.f32.mxu0 %v9541_v0 }
 0x1aa   : > { %2176 = vmatprep.subr.mxu0 %v1784_v58  ;;  %v2807_v46 = vand.u32 4294901760, %v2806_v43 }
 0x1ac   : > { %v2808_v49 = vsub.f32 %v2806_v43, %v2807_v46 }
 0x1ae   : > { %v2809_v51 = vand.u32 4294901760, %v2808_v49 }
 0x1b0   : > { %2169 = vmatmul.mubr.f32.vlgmr.msra.gmra.mrb[0].mxu0 %v9793_v36 }
 0x1b1   : > { %2178 = vmatpush1.msra.mxu0 %v1786_v59  ;;  %2241 = vmatprep.mubr.f32.mxu0 %v9541_v0 }
 0x1b2   : > { %2261 = vmatprep.subr.mxu0 %v2260_v16 }
 0x1b8   : > { %2243 = vmatmul.mubr.f32.vlgmr.msra.gmra.mrb[0].mxu0 %v9793_v36  ;;  %v2817_v36 = vsub.f32 %v2736_v31, %v2738_v33 }
 0x1b9   : > { %2263 = vmatpush1.msra.mxu0 %v2262_v21  ;;  %2326 = vmatprep.mubr.f32.mxu0 %v9541_v0 }
 0x1ba   : > { %2343 = vmatprep.subr.mxu0 %v2342_v27  ;;  %v2818_v39 = vand.u32 4294901760, %v2817_v36  ;;  %v3717_v27 = vsel %vm322_vm2, %v9824_v4, 0 }
 0x1bb   : > { %v3719_v62 = vand.u32 4294901760, %v3717_v27 }
 0x1bc   : > { %v2819_v45 = vsub.f32 %v2817_v36, %v2818_v39 }
 0x1bd   : > { %v3798_v31 = vsub.f32 %v3717_v27, %v3719_v62 }
 0x1be   : > { %v2820_v48 = vand.u32 4294901760, %v2819_v45 }
 0x1bf   : > { %v3799_v4 = vand.u32 4294901760, %v3798_v31 }
 0x1c0   : > { %2332 = vmatmul.mubr.f32.vlgmr.msra.gmra.mrb[0].mxu0 %v2331_v29  ;;  %v3713_v29 = vsel %vm318_vm0, %v9194_v28, 0 }
 0x1c1   : > { %2349 = vmatpush1.msra.mxu0 %v2348_v30  ;;  %2412 = vmatprep.mubr.f32.mxu0 %v9541_v0  ;;  %v3715_v30 = vsel %vm322_vm2, %v9819_v1, 0  ;;  %v3786_v32 = vand.u32 4294901760, %v3713_v29 }
 0x1c2   : > { %2422 = vmatprep.subr.mxu0 %v2339_v19 }
 0x1c3   : > { %v3787_v34 = vsub.f32 %v3713_v29, %v3786_v32 }
 0x1c8   : > { %2414 = vmatmul.mubr.f32.vlgmr.msra.gmra.mrb[0].mxu0 %v2327_v20 }
 0x1c9   : > { %2425 = vmatpush1.msra.mxu0 %v2345_v23  ;;  %2488 = vmatprep.mubr.f32.mxu0 %v9541_v0 }
 0x1ca   : > { %2498 = vmatprep.subr.mxu0 %v2260_v16 }
 0x1d0   : > { %2491 = vmatmul.mubr.f32.vlgmr.msra.gmra.mrb[0].mxu0 %v2328_v22 }
 0x1d1   : > { %2500 = vmatpush1.msra.mxu0 %v2262_v21  ;;  %2563 = vmatprep.mubr.f32.mxu0 %v9541_v0 }
 0x1d2   : > { %2576 = vmatprep.subr.mxu0 %v2340_v5 }
 0x1d8   : > { %2567 = vmatmul.mubr.f32.vlgmr.msra.gmra.mrb[0].mxu0 %v2329_v25 }
 0x1d9   : > { %2580 = vmatpush1.msra.mxu0 %v2346_v26  ;;  %2643 = vmatprep.mubr.f32.mxu0 %v9541_v0  ;;  %v4664_v26 = vld [vmem:[%s10251_s3] sm:$0xf] }
 0x1da   : > { %2652 = vmatprep.subr.mxu0 %v2260_v16  ;;  %4667 = vperm.xlu0 %9470, %v4664_v26  }
 0x1e0   : > { %2645 = vmatmul.mubr.f32.vlgmr.msra.gmra.mrb[0].mxu0 %v2327_v20 }
 0x1e1   : > { %2654 = vmatpush1.msra.mxu0 %v2262_v21  ;;  %2717 = vmatprep.mubr.f32.mxu0 %v9541_v0 }
 0x1e2   : > { %2739 = vmatprep.subr.mxu0 %v2738_v33 }
 0x1e8   : > { %2719 = vmatmul.mubr.f32.vlgmr.msra.gmra.mrb[0].mxu0 %v2327_v20  ;;  %v3312_v20 = vand.u32 4294901760, %v3311_v17 }
 0x1e9   : > { %2741 = vmatpush1.msra.mxu0 %v2740_v38  ;;  %2804 = vmatprep.mubr.f32.mxu0 %v9541_v0 }
 0x1ea   : > { %2821 = vmatprep.subr.mxu0 %v2820_v48  ;;  %v3313_v22 = vsub.f32 %v3311_v17, %v3312_v20 }
 0x1ec   : > { %v3314_v24 = vand.u32 4294901760, %v3313_v22 }
 0x1f0   : > { %2810 = vmatmul.mubr.f32.vlgmr.msra.gmra.mrb[0].mxu0 %v2809_v51 }
 0x1f1   : > { %2827 = vmatpush1.msra.mxu0 %v2826_v52  ;;  %2890 = vmatprep.mubr.f32.mxu0 %v9541_v0 }
 0x1f2   : > { %2900 = vmatprep.subr.mxu0 %v2817_v36  ;;  %v3800_v36 = vsub.f32 %v3798_v31, %v3799_v4 }
 0x1f8   : > { %2892 = vmatmul.mubr.f32.vlgmr.msra.gmra.mrb[0].mxu0 %v9861_v37 }
 0x1f9   : > { %2903 = vmatpush1.msra.mxu0 %v2823_v44  ;;  %2966 = vmatprep.mubr.f32.mxu0 %v9541_v0 }
 0x1fa   : > { %2976 = vmatprep.subr.mxu0 %v2738_v33 }
 0x200   : > { %2969 = vmatmul.mubr.f32.vlgmr.msra.gmra.mrb[0].mxu0 %v2806_v43  ;;  %v3217_v53 = vpop.permute.xlu0 %3216 }
 0x201   : > { %2978 = vmatpush1.msra.mxu0 %v2740_v38  ;;  %3041 = vmatprep.mubr.f32.mxu0 %v9541_v0  ;;  %v3219_v54 = vpop.permute.xlu1 %3218 }
 0x202   : > { %3054 = vmatprep.subr.mxu0 %v2818_v39  ;;  %v3220_v58 = vsel %vm301_vm4, %v3217_v53, %v3219_v54  ;;  %v3221_v59 = vsel %vm301_vm4, %v3219_v54, %v3217_v53  ;;  %v3801_v39 = vand.u32 4294901760, %v3800_v36 }
 0x204   : > { %v3223_v55 = vpop.permute.xlu0 %3222 }
 0x205   : > { %v3225_v56 = vpop.permute.xlu1 %3224 }
 0x206   : > { %v3226_v60 = vsel %vm308_vm5, %v3223_v55, %v3225_v56  ;;  %v3227_v61 = vsel %vm308_vm5, %v3225_v56, %v3223_v55 }
 0x207   : > { %v3229_v63 = vsel %vm262_vm7, %v3227_v61, %v3220_v58  ;;  %v9885_v2 = vsel %vm273_vm11, %v3221_v59, %v3226_v60  ;;  %v9889_v3 = vsel %vm274_vm10, %v3220_v58, %v3227_v61  ;;  %v3228_v6 = vsel %vm261_vm6, %v3226_v60, %v3221_v59 }
 0x208   : > { %3045 = vmatmul.mubr.f32.vlgmr.msra.gmra.mrb[0].mxu0 %v2807_v46  ;;  %v3241_v8 = vsel %vm322_vm2, %v3229_v63, 0  ;;  %v3238_v11 = vsel %vm322_vm2, %v3228_v6, 0  ;;  %v4195_v46 = vsel %vm322_vm2, %v9889_v3, 0  ;;  %v4192_v50 = vsel %vm322_vm2, %v9885_v2, 0 }
 0x209   : > { %3058 = vmatpush1.msra.mxu0 %v2824_v47  ;;  %3121 = vmatprep.mubr.f32.mxu0 %v9541_v0  ;;  %v3243_v10 = vand.u32 4294901760, %v3241_v8  ;;  %v3245_v15 = vand.u32 4294901760, %v3238_v11  ;;  %v9195_v47 = vld [vmem:[%s10250_s2 + $0x20] sm:$0xf]  ;;  %v4197_v48 = vand.u32 4294901760, %v4195_v46  ;;  %v4199_v53 = vand.u32 4294901760, %v4192_v50 }
 0x20a   : > { %3130 = vmatprep.subr.mxu0 %v2738_v33  ;;  %v3721_v33 = vand.u32 4294901760, %v3715_v30  ;;  %v4189_v49 = vsel %vm318_vm0, %v9195_v47, 0 }
 0x20b   : > { %v3322_v13 = vsub.f32 %v3241_v8, %v3243_v10  ;;  %v3328_v18 = vsub.f32 %v3238_v11, %v3245_v15  ;;  %v4276_v51 = vsub.f32 %v4195_v46, %v4197_v48  ;;  %v4264_v52 = vand.u32 4294901760, %v4189_v49 }
 0x20c   : > { %v3804_v35 = vsub.f32 %v3715_v30, %v3721_v33  ;;  %v4282_v56 = vsub.f32 %v4192_v50, %v4199_v53 }
 0x20d   : > { %v3323_v16 = vand.u32 4294901760, %v3322_v13  ;;  %v3329_v21 = vand.u32 4294901760, %v3328_v18  ;;  %v4277_v54 = vand.u32 4294901760, %v4276_v51  ;;  %v4265_v55 = vsub.f32 %v4189_v49, %v4264_v52 }
 0x20e   : > { %v4283_v59 = vand.u32 4294901760, %v4282_v56 }
 0x20f   : > { %v3324_v19 = vsub.f32 %v3322_v13, %v3323_v16  ;;  %v3330_v23 = vsub.f32 %v3328_v18, %v3329_v21  ;;  %v4278_v57 = vsub.f32 %v4276_v51, %v4277_v54  ;;  %v4266_v58 = vand.u32 4294901760, %v4265_v55 }
 0x210   : > { %3123 = vmatmul.mubr.f32.vlgmr.msra.gmra.mrb[0].mxu0 %v9861_v37  ;;  %v4284_v63 = vsub.f32 %v4282_v56, %v4283_v59 }
 0x211   : > { %3132 = vmatpush1.msra.mxu0 %v2740_v38  ;;  %3195 = vmatprep.mubr.f32.mxu0 %v9541_v0  ;;  %v3325_v5 = vand.u32 4294901760, %v3324_v19  ;;  %v3331_v25 = vand.u32 4294901760, %v3330_v23  ;;  %v3805_v38 = vand.u32 4294901760, %v3804_v35  ;;  %v4279_v60 = vand.u32 4294901760, %v4278_v57 }
 0x212   : > { %3244 = vmatprep.subr.mxu0 %v3243_v10  ;;  %v4267_v61 = vsub.f32 %v4265_v55, %v4266_v58  ;;  %v4285_v3 = vand.u32 4294901760, %v4284_v63 }
 0x213   : > { %v3806_v1 = vsub.f32 %v3804_v35, %v3805_v38 }
 0x214   : > { %v4268_v2 = vand.u32 4294901760, %v4267_v61 }
 0x215   : > { %v3807_v45 = vand.u32 4294901760, %v3806_v1 }
 0x218   : > { %3197 = vmatmul.mubr.f32.vlgmr.msra.gmra.mrb[0].mxu0 %v9861_v37  ;;  %v3788_v37 = vand.u32 4294901760, %v3787_v34 }
 0x219   : > { %3246 = vmatpush1.msra.mxu0 %v3245_v15  ;;  %3309 = vmatprep.mubr.f32.mxu0 %v9541_v0 }
 0x21a   : > { %3326 = vmatprep.subr.mxu0 %v3325_v5  ;;  %v3789_v43 = vsub.f32 %v3787_v34, %v3788_v37 }
 0x21c   : > { %v3790_v44 = vand.u32 4294901760, %v3789_v43 }
 0x220   : > { %3315 = vmatmul.mubr.f32.vlgmr.msra.gmra.mrb[0].mxu0 %v3314_v24 }
 0x221   : > { %3332 = vmatpush1.msra.mxu0 %v3331_v25  ;;  %3395 = vmatprep.mubr.f32.mxu0 %v9541_v0 }
 0x222   : > { %3405 = vmatprep.subr.mxu0 %v3322_v13 }
 0x228   : > { %3397 = vmatmul.mubr.f32.vlgmr.msra.gmra.mrb[0].mxu0 %v3310_v14 }
 0x229   : > { %3408 = vmatpush1.msra.mxu0 %v3328_v18  ;;  %3471 = vmatprep.mubr.f32.mxu0 %v9541_v0 }
 0x22a   : > { %3481 = vmatprep.subr.mxu0 %v3243_v10 }
 0x230   : > { %3474 = vmatmul.mubr.f32.vlgmr.msra.gmra.mrb[0].mxu0 %v3311_v17 }
 0x231   : > { %3483 = vmatpush1.msra.mxu0 %v3245_v15  ;;  %3546 = vmatprep.mubr.f32.mxu0 %v9541_v0 }
 0x232   : > { %3559 = vmatprep.subr.mxu0 %v3323_v16 }
 0x238   : > { %3550 = vmatmul.mubr.f32.vlgmr.msra.gmra.mrb[0].mxu0 %v3312_v20 }
 0x239   : > { %3563 = vmatpush1.msra.mxu0 %v3329_v21  ;;  %3626 = vmatprep.mubr.f32.mxu0 %v9541_v0 }
 0x23a   : > { %3635 = vmatprep.subr.mxu0 %v3243_v10 }
 0x240   : > { %3628 = vmatmul.mubr.f32.vlgmr.msra.gmra.mrb[0].mxu0 %v3310_v14 }
 0x241   : > { %3637 = vmatpush1.msra.mxu0 %v3245_v15  ;;  %3700 = vmatprep.mubr.f32.mxu0 %v9541_v0 }
 0x242   : > { %3720 = vmatprep.subr.mxu0 %v3719_v62 }
 0x248   : > { %3702 = vmatmul.mubr.f32.vlgmr.msra.gmra.mrb[0].mxu0 %v3310_v14 }
 0x249   : > { %3722 = vmatpush1.msra.mxu0 %v3721_v33  ;;  %3785 = vmatprep.mubr.f32.mxu0 %v9541_v0 }
 0x24a   : > { %3802 = vmatprep.subr.mxu0 %v3801_v39 }
 0x250   : > { %3791 = vmatmul.mubr.f32.vlgmr.msra.gmra.mrb[0].mxu0 %v3790_v44 }
 0x251   : > { %3808 = vmatpush1.msra.mxu0 %v3807_v45  ;;  %3871 = vmatprep.mubr.f32.mxu0 %v9541_v0 }
 0x252   : > { %3881 = vmatprep.subr.mxu0 %v3798_v31  ;;  %v9196_v31 = vld [vmem:[%s10252_s4 + $0x4] sm:$0xf] }
 0x258   : > { %3873 = vmatmul.mubr.f32.vlgmr.msra.gmra.mrb[0].mxu0 %v3786_v32 }
 0x259   : > { %3884 = vmatpush1.msra.mxu0 %v3804_v35  ;;  %3947 = vmatprep.mubr.f32.mxu0 %v9541_v0  ;;  %v4668_v6 = vpop.permute.xlu0 %4667 }
 0x25a   : > { %3957 = vmatprep.subr.mxu0 %v3719_v62 }
 0x260   : > { %3950 = vmatmul.mubr.f32.vlgmr.msra.gmra.mrb[0].mxu0 %v3787_v34 }
 0x261   : > { %3959 = vmatpush1.msra.mxu0 %v3721_v33  ;;  %4022 = vmatprep.mubr.f32.mxu0 %v9541_v0 }
 0x262   : > { %4035 = vmatprep.subr.mxu0 %v3799_v4 }
 0x268   : > { %4026 = vmatmul.mubr.f32.vlgmr.msra.gmra.mrb[0].mxu0 %v3788_v37 }
 0x269   : > { %4039 = vmatpush1.msra.mxu0 %v3805_v38  ;;  %4102 = vmatprep.mubr.f32.mxu0 %v9541_v0 }
 0x26a   : > { %4111 = vmatprep.subr.mxu0 %v3719_v62 }
 0x270   : > { %4104 = vmatmul.mubr.f32.vlgmr.msra.gmra.mrb[0].mxu0 %v3786_v32 }
 0x271   : > { %4113 = vmatpush1.msra.mxu0 %v3721_v33  ;;  %4176 = vmatprep.mubr.f32.mxu0 %v9541_v0 }
 0x272   : > { %4198 = vmatprep.subr.mxu0 %v4197_v48 }
 0x278   : > { %4178 = vmatmul.mubr.f32.vlgmr.msra.gmra.mrb[0].mxu0 %v3786_v32  ;;  %v4732_v32 = vsel %vm318_vm0, %v9196_v31, 0 }
 0x279   : > { %4200 = vmatpush1.msra.mxu0 %v4199_v53  ;;  %4263 = vmatprep.mubr.f32.mxu0 %v9541_v0  ;;  %v4806_v33 = vand.u32 4294901760, %v4732_v32 }
 0x27a   : > { %4280 = vmatprep.subr.mxu0 %v4279_v60 }
 0x27b   : > { %v4807_v4 = vsub.f32 %v4732_v32, %v4806_v33 }
 0x27d   : > { %v4808_v36 = vand.u32 4294901760, %v4807_v4 }
 0x27f   : > { %v4809_v1 = vsub.f32 %v4807_v4, %v4808_v36 }
 0x280   : > { %4269 = vmatmul.mubr.f32.vlgmr.msra.gmra.mrb[0].mxu0 %v4268_v2 }
 0x281   : > { %4286 = vmatpush1.msra.mxu0 %v4285_v3  ;;  %4349 = vmatprep.mubr.f32.mxu0 %v9541_v0 }
 0x282   : > { %4359 = vmatprep.subr.mxu0 %v4276_v51 }
 0x288   : > { %4351 = vmatmul.mubr.f32.vlgmr.msra.gmra.mrb[0].mxu0 %v4264_v52 }
 0x289   : > { %4362 = vmatpush1.msra.mxu0 %v4282_v56  ;;  %4425 = vmatprep.mubr.f32.mxu0 %v9541_v0 }
 0x28a   : > { %4435 = vmatprep.subr.mxu0 %v4197_v48 }
 0x290   : > { %4428 = vmatmul.mubr.f32.vlgmr.msra.gmra.mrb[0].mxu0 %v4265_v55 }
 0x291   : > { %4437 = vmatpush1.msra.mxu0 %v4199_v53  ;;  %4500 = vmatprep.mubr.f32.mxu0 %v9541_v0 }
 0x292   : > { %4513 = vmatprep.subr.mxu0 %v4277_v54 }
 0x298   : > { %4504 = vmatmul.mubr.f32.vlgmr.msra.gmra.mrb[0].mxu0 %v4266_v58  ;;  %v4728_v58 = vld [vmem:[%s10252_s4] sm:$0xf] }
 0x299   : > { %4517 = vmatpush1.msra.mxu0 %v4283_v59  ;;  %4580 = vmatprep.mubr.f32.mxu0 %v9541_v0  ;;  %v5205_v59 = vsel %vm318_vm0, %v4728_v58, 0 }
 0x29a   : > { %4589 = vmatprep.subr.mxu0 %v4197_v48  ;;  %v4810_v48 = vand.u32 4294901760, %v4809_v1  ;;  %v9986_v60 = vand.u32 4294901760, %v5205_v59 }
 0x29c   : > { %v5281_v63 = vsub.f32 %v5205_v59, %v9986_v60 }
 0x2a0   : > { %4582 = vmatmul.mubr.f32.vlgmr.msra.gmra.mrb[0].mxu0 %v4264_v52 }
 0x2a1   : > { %4591 = vmatpush1.msra.mxu0 %v4199_v53  ;;  %4654 = vmatprep.mubr.f32.mxu0 %v9541_v0 }
 0x2a8   : > { %4656 = vmatmul.mubr.f32.vlgmr.msra.gmra.mrb[0].mxu0 %v4264_v52 }
 0x37b   : > { %v4657_v8 = vpop.f32.mrb[0].mxu0 }
 0x37c   : > { %v4670_v9 = vadd.f32 %v4668_v6, %v4657_v8  ;;  %v4659_v10 = vpop.f32.mrb[1].mxu0 }
 0x37d   : > { %v4671_v11 = vadd.f32 %v4668_v6, %v4659_v10  ;;  %v5282_v6 = vand.u32 4294901760, %v5281_v63 }
 0x37e   : > { %v4672_v13 = vsel %vm322_vm2, %v4670_v9, 0.0 }
 0x37f   : > { %v4673_v14 = vsel %vm322_vm2, %v4671_v11, 0.0  ;;  %v5283_v10 = vsub.f32 %v5281_v63, %v5282_v6 }
 0x380   : > { %v4674_v15 = vadd.f32 %v4673_v14, %v4672_v13 }
 0x382   : > { %4675 = vadd.xlane.f32.xlu1 %v4674_v15 }
 0x40f   : > { %v4676_v16 = vpop.xlane.xlu1 %4675 }
 0x410   : > { %v4677_v17 = vmul.f32 0.00390625, %v4676_v16 }
 0x412   : > { %v4678_v18 = vsub.f32 %v4670_v9, %v4677_v17  ;;  %v4679_v19 = vsub.f32 %v4671_v11, %v4677_v17 }
 0x414   : > { %v4680_v20 = vmul.f32 %v4678_v18, %v4678_v18  ;;  %v4681_v21 = vmul.f32 %v4679_v19, %v4679_v19 }
 0x416   : > { %v4682_v5 = vsel %vm322_vm2, %v4680_v20, 0.0  ;;  %v4683_v22 = vsel %vm322_vm2, %v4681_v21, 0.0 }
 0x417   : > { %v4684_v23 = vadd.f32 %v4683_v22, %v4682_v5 }
 0x419   : > { %4685 = vadd.xlane.f32.xlu0 %v4684_v23 }
 0x4a6   : > { %v4686_v24 = vpop.xlane.xlu0 %4685 }
 0x4a7   : > { %v4687_v25 = vmul.f32 0.00390625, %v4686_v24 }
 0x4a9   : > { %v4688_v26 = vadd.f32 1e-05, %v4687_v25  ;;  %v5284_v25 = vand.u32 4294901760, %v5283_v10 }
 0x4ab   : > { %9472 = vrsqrt.f32 %v4688_v26 }
 0x4b5   : > { %v9473_v27 = vpop.eup %9472 }
 0x4b6   : > { %v4690_v28 = vmul.f32 %v9473_v27, %v4678_v18  ;;  %v4691_v29 = vmul.f32 %v9473_v27, %v4679_v19 }
 0x4b8   : > { %v4692_v62 = vmax.f32 %v4690_v28, 0.0  ;;  %v4693_v30 = vmax.f32 %v4691_v29, 0.0 }
 0x4ba   : > { %4699 = vrot.lane.b32.xlu0 %v4692_v62, %s9543_s15  ;;  %4695 = vrot.lane.b32.xlu1 %v4692_v62, %s9542_s14 }
 0x4be   : > { %4701 = vrot.lane.b32.xlu1 %v4693_v30, %s9543_s15 }
 0x4c2   : > { %4707 = vrot.lane.b32.xlu1 %v4693_v30, %s9544_s16 }
 0x52c   : > { %v4700_v34 = vpop.permute.xlu0 %4699  ;;  %v4696_v35 = vpop.permute.xlu1 %4695 }
 0x52d   : > { %v9950_v37 = vsel %vm285_vm1, %v4696_v35, %v4700_v34 }
 0x52e   : > { %v4735_v38 = vsel %vm322_vm2, %v9950_v37, 0  ;;  %4712 = vrot.lane.b32.xlu0 %v9950_v37, %s9546_s19 }
 0x52f   : > { %v4741_v39 = vand.u32 4294901760, %v4735_v38 }
 0x530   : > { %v4702_v43 = vpop.permute.xlu1 %4701 }
 0x531   : > { %v9957_v44 = vsel %vm285_vm1, %v4700_v34, %v4702_v43  ;;  %v4824_v45 = vsub.f32 %v4735_v38, %v4741_v39  ;;  %v9197_v34 = vld [vmem:[%s10252_s4 + $0x8] sm:$0xf] }
 0x532   : > { %v4737_v46 = vsel %vm322_vm2, %v9957_v44, 0  ;;  %4718 = vrot.lane.b32.xlu0 %v9950_v37, %s9547_s20  ;;  %4714 = vrot.lane.b32.xlu1 %v9957_v44, %s9546_s19 }
 0x533   : > { %v4739_v47 = vand.u32 4294901760, %v4737_v46  ;;  %v4825_v49 = vand.u32 4294901760, %v4824_v45 }
 0x534   : > { %v4708_v51 = vpop.permute.xlu1 %4707 }
 0x535   : > { %4740 = vmatprep.subr.mxu1 %v4739_v47  ;;  %v4818_v50 = vsub.f32 %v4737_v46, %v4739_v47  ;;  %v4826_v53 = vsub.f32 %v4824_v45, %v4825_v49  ;;  %v9970_v54 = vsel %vm285_vm1, %v4702_v43, %v4708_v51 }
 0x536   : > { %6157 = vrot.lane.b32.xlu0 %v9950_v37, %s9542_s14  ;;  %4720 = vrot.lane.b32.xlu1 %v9957_v44, %s9547_s20 }
 0x537   : > { %4742 = vmatpush1.msra.mxu1 %v4741_v39  ;;  %v4819_v52 = vand.u32 4294901760, %v4818_v50  ;;  %v4827_v57 = vand.u32 4294901760, %v4826_v53 }
 0x538   : > { %4811 = vmatmul.mubr.f32.vlgmr.msra.gmra.mrb[0].mxu1 %v4810_v48 }
 0x539   : > { %v4820_v55 = vsub.f32 %v4818_v50, %v4819_v52  ;;  %4891 = vmatprep.mubr.f32.mxu1 %v9541_v0 }
 0x53a   : > { %6159 = vrot.lane.b32.xlu1 %v9957_v44, %s9542_s14  ;;  %6161 = vrot.lane.b32.xlu0 %v9970_v54, %s9542_s14 }
 0x53b   : > { %v4821_v56 = vand.u32 4294901760, %v4820_v55  ;;  %v9198_v55 = vld [vmem:[%s10252_s4 + $0xc] sm:$0xf] }
 0x53d   : > { %4822 = vmatprep.subr.mxu1 %v4821_v56  ;;  %v6186_v56 = vsel %vm318_vm0, %v9198_v55, 0 }
 0x53e   : > { %4828 = vmatpush1.msra.mxu1 %v4827_v57  ;;  %v10052_v57 = vand.u32 4294901760, %v6186_v56 }
 0x53f   : > { %4901 = vmatprep.subr.mxu1 %v4818_v50 }
 0x540   : > { %4893 = vmatmul.mubr.f32.vlgmr.msra.gmra.mrb[0].mxu1 %v4806_v33  ;;  %v6262_v58 = vsub.f32 %v6186_v56, %v10052_v57 }
 0x541   : > { %4904 = vmatpush1.msra.mxu1 %v4824_v45  ;;  %4967 = vmatprep.mubr.f32.mxu1 %v9541_v0 }
 0x542   : > { %4977 = vmatprep.subr.mxu1 %v4739_v47 }
 0x548   : > { %4970 = vmatmul.mubr.f32.vlgmr.msra.gmra.mrb[0].mxu1 %v4807_v4 }
 0x549   : > { %4979 = vmatpush1.msra.mxu1 %v4741_v39  ;;  %5042 = vmatprep.mubr.f32.mxu1 %v9541_v0 }
 0x54a   : > { %5055 = vmatprep.subr.mxu1 %v4819_v52 }
 0x550   : > { %5046 = vmatmul.mubr.f32.vlgmr.msra.gmra.mrb[0].mxu1 %v4808_v36 }
 0x551   : > { %5059 = vmatpush1.msra.mxu1 %v4825_v49  ;;  %5122 = vmatprep.mubr.f32.mxu1 %v9541_v0 }
 0x552   : > { %5131 = vmatprep.subr.mxu1 %v4739_v47 }
 0x558   : > { %5124 = vmatmul.mubr.f32.vlgmr.msra.gmra.mrb[0].mxu1 %v4806_v33 }
 0x559   : > { %5133 = vmatpush1.msra.mxu1 %v4741_v39  ;;  %5196 = vmatprep.mubr.f32.mxu1 %v9541_v0 }
 0x560   : > { %5198 = vmatmul.mubr.f32.vlgmr.msra.gmra.mrb[0].mxu1 %v4806_v33 }
 0x561   : > { %5279 = vmatprep.mubr.f32.mxu1 %v9541_v0 }
 0x5a0   : > { %v4713_v61 = vpop.permute.xlu0 %4712 }
 0x5a4   : > { %v4719_v2 = vpop.permute.xlu0 %4718  ;;  %v4715_v3 = vpop.permute.xlu1 %4714 }
 0x5a5   : > { %v4716_v11 = vsel %vm301_vm4, %v4713_v61, %v4715_v3  ;;  %v4717_v13 = vsel %vm301_vm4, %v4715_v3, %v4713_v61  ;;  %v6263_v61 = vand.u32 4294901760, %v6262_v58 }
 0x5a7   : > { %v6264_v3 = vsub.f32 %v6262_v58, %v6263_v61 }
 0x5a8   : > { %v6158_v8 = vpop.permute.xlu0 %6157  ;;  %v4721_v9 = vpop.permute.xlu1 %4720 }
 0x5a9   : > { %v4722_v14 = vsel %vm308_vm5, %v4719_v2, %v4721_v9  ;;  %v4723_v15 = vsel %vm308_vm5, %v4721_v9, %v4719_v2 }
 0x5aa   : > { %v4724_v16 = vsel %vm261_vm6, %v4722_v14, %v4717_v13  ;;  %v4725_v17 = vsel %vm262_vm7, %v4723_v15, %v4716_v11  ;;  %v4727_v33 = vsel %vm274_vm10, %v4716_v11, %v4723_v15  ;;  %v4726_v36 = vsel %vm273_vm11, %v4717_v13, %v4722_v14 }
 0x5ab   : > { %v5208_v18 = vsel %vm322_vm2, %v4724_v16, 0  ;;  %v5211_v19 = vsel %vm322_vm2, %v4725_v17, 0  ;;  %v5687_v4 = vsel %vm322_vm2, %v4727_v33, 0  ;;  %v5684_v38 = vsel %vm322_vm2, %v4726_v36, 0  ;;  %v9073_v33 = vld [vmem:[%s10253_s5] sm:$0xf] }
 0x5ac   : > { %v5213_v20 = vand.u32 4294901760, %v5211_v19  ;;  %v5215_v21 = vand.u32 4294901760, %v5208_v18  ;;  %v6162_v5 = vpop.permute.xlu0 %6161  ;;  %v6160_v22 = vpop.permute.xlu1 %6159  ;;  %v5689_v35 = vand.u32 4294901760, %v5687_v4  ;;  %v5691_v1 = vand.u32 4294901760, %v5684_v38 }
 0x5ad   : > { %v10004_v23 = vsel %vm1752_vm8, %v6160_v22, %v6162_v5  ;;  %v10007_v24 = vsel %vm1752_vm8, %v6158_v8, %v6160_v22  ;;  %v6265_v5 = vand.u32 4294901760, %v6264_v3 }
 0x5ae   : > { %v5292_v26 = vsub.f32 %v5211_v19, %v5213_v20  ;;  %v5298_v27 = vsub.f32 %v5208_v18, %v5215_v21  ;;  %5214 = vmatprep.subr.mxu1 %v5213_v20  ;;  %6169 = vrot.lane.b32.xlu0 %v10004_v23, %s9546_s19  ;;  %v5768_v39 = vsub.f32 %v5687_v4, %v5689_v35 }
 0x5af   : > { %6167 = vrot.lane.b32.xlu1 %v10007_v24, %s9546_s19  ;;  %5216 = vmatpush1.msra.mxu1 %v5215_v21  ;;  %v5774_v46 = vsub.f32 %v5684_v38, %v5691_v1 }
 0x5b0   : > { %v5293_v28 = vand.u32 4294901760, %v5292_v26  ;;  %v5299_v62 = vand.u32 4294901760, %v5298_v27  ;;  %5285 = vmatmul.mubr.f32.vlgmr.msra.gmra.mrb[0].mxu1 %v5284_v25 }
 0x5b1   : > { %5365 = vmatprep.mubr.f32.mxu1 %v9541_v0  ;;  %v5775_v49 = vand.u32 4294901760, %v5774_v46 }
 0x5b2   : > { %v5294_v29 = vsub.f32 %v5292_v26, %v5293_v28  ;;  %v5300_v30 = vsub.f32 %v5298_v27, %v5299_v62  ;;  %6175 = vrot.lane.b32.xlu0 %v10004_v23, %s9547_s20 }
 0x5b3   : > { %6173 = vrot.lane.b32.xlu1 %v10007_v24, %s9547_s20  ;;  %v5776_v52 = vsub.f32 %v5774_v46, %v5775_v49 }
 0x5b4   : > { %v5295_v31 = vand.u32 4294901760, %v5294_v29  ;;  %v5301_v32 = vand.u32 4294901760, %v5300_v30 }
 0x5b6   : > { %5296 = vmatprep.subr.mxu1 %v5295_v31  ;;  %7617 = vrot.lane.b32.xlu0 %v9957_v44, %s9548_s10  ;;  %v5769_v44 = vand.u32 4294901760, %v5768_v39 }
 0x5b7   : > { %7615 = vrot.lane.b32.xlu1 %v9950_v37, %s9548_s10  ;;  %5302 = vmatpush1.msra.mxu1 %v5301_v32  ;;  %v5681_v37 = vsel %vm318_vm0, %v9197_v34, 0  ;;  %v6668_v34 = vsel %vm322_vm2, %v10004_v23, 0 }
 0x5b8   : > { %5367 = vmatmul.mubr.f32.vlgmr.msra.gmra.mrb[0].mxu1 %v9986_v60  ;;  %5375 = vmatprep.subr.mxu1 %v5292_v26  ;;  %v5756_v43 = vand.u32 4294901760, %v5681_v37  ;;  %v5770_v47 = vsub.f32 %v5768_v39, %v5769_v44  ;;  %v6670_v36 = vand.u32 4294901760, %v6668_v34 }
 0x5b9   : > { %5378 = vmatpush1.msra.mxu1 %v5298_v27  ;;  %5441 = vmatprep.mubr.f32.mxu1 %v9541_v0 }
 0x5ba   : > { %5451 = vmatprep.subr.mxu1 %v5213_v20  ;;  %v5757_v45 = vsub.f32 %v5681_v37, %v5756_v43  ;;  %v5771_v50 = vand.u32 4294901760, %v5770_v47  ;;  %v6749_v38 = vsub.f32 %v6668_v34, %v6670_v36 }
 0x5bb   : > { %7619 = vrot.lane.b32.xlu1 %v9970_v54, %s9548_s10  ;;  %v5777_v54 = vand.u32 4294901760, %v5776_v52  ;;  %s242_s10 = sand.u32 1, %s9531_s22  }
 0x5bc   : > { %v5758_v48 = vand.u32 4294901760, %v5757_v45  ;;  %v6750_v23 = vand.u32 4294901760, %v6749_v38  ;;  %s9185_s18 = sshll.u32 %s242_s10, 3  ;;  %s9108_s11 = scalar_lea.sflag [#allocation3], %s242_s10 }
 0x5bd   : > { %s244_s28 = scalar_lea.vmem [#allocation2], %s9185_s18 }
 0x5be   : > { %v5759_v51 = vsub.f32 %v5757_v45, %v5758_v48 }
 0x5c0   : > { %5444 = vmatmul.mubr.f32.vlgmr.msra.gmra.mrb[0].mxu1 %v5281_v63  ;;  %v5760_v53 = vand.u32 4294901760, %v5759_v51 }
 0x5c1   : > { %5453 = vmatpush1.msra.mxu1 %v5215_v21  ;;  %5516 = vmatprep.mubr.f32.mxu1 %v9541_v0 }
 0x5c2   : > { %5529 = vmatprep.subr.mxu1 %v5293_v28 }
 0x5c8   : > { %5520 = vmatmul.mubr.f32.vlgmr.msra.gmra.mrb[0].mxu1 %v5282_v6 }
 0x5c9   : > { %5533 = vmatpush1.msra.mxu1 %v5299_v62  ;;  %5596 = vmatprep.mubr.f32.mxu1 %v9541_v0 }
 0x5ca   : > { %5605 = vmatprep.subr.mxu1 %v5213_v20 }
 0x5d0   : > { %5598 = vmatmul.mubr.f32.vlgmr.msra.gmra.mrb[0].mxu1 %v9986_v60 }
 0x5d1   : > { %5607 = vmatpush1.msra.mxu1 %v5215_v21  ;;  %5670 = vmatprep.mubr.f32.mxu1 %v9541_v0 }
 0x5d2   : > { %5690 = vmatprep.subr.mxu1 %v5689_v35 }
 0x5d8   : > { %5672 = vmatmul.mubr.f32.vlgmr.msra.gmra.mrb[0].mxu1 %v9986_v60 }
 0x5d9   : > { %5692 = vmatpush1.msra.mxu1 %v5691_v1  ;;  %5755 = vmatprep.mubr.f32.mxu1 %v9541_v0 }
 0x5da   : > { %5772 = vmatprep.subr.mxu1 %v5771_v50 }
 0x5e0   : > { %5761 = vmatmul.mubr.f32.vlgmr.msra.gmra.mrb[0].mxu1 %v5760_v53 }
 0x5e1   : > { %5778 = vmatpush1.msra.mxu1 %v5777_v54  ;;  %5841 = vmatprep.mubr.f32.mxu1 %v9541_v0  ;;  %v9200_v54 = vld [vmem:[%s10252_s4 + $0x14] sm:$0xf] }
 0x5e2   : > { %5851 = vmatprep.subr.mxu1 %v5768_v39  ;;  %v6666_v39 = vsel %vm322_vm2, %v10007_v24, 0  ;;  %v7140_v56 = vsel %vm318_vm0, %v9200_v54, 0 }
 0x5e8   : > { %5843 = vmatmul.mubr.f32.vlgmr.msra.gmra.mrb[0].mxu1 %v5756_v43 }
 0x5e9   : > { %5854 = vmatpush1.msra.mxu1 %v5774_v46  ;;  %5917 = vmatprep.mubr.f32.mxu1 %v9541_v0  ;;  %v6751_v46 = vsub.f32 %v6749_v38, %v6750_v23 }
 0x5ea   : > { %5927 = vmatprep.subr.mxu1 %v5689_v35 }
 0x5f0   : > { %5920 = vmatmul.mubr.f32.vlgmr.msra.gmra.mrb[0].mxu1 %v5757_v45 }
 0x5f1   : > { %5929 = vmatpush1.msra.mxu1 %v5691_v1  ;;  %5992 = vmatprep.mubr.f32.mxu1 %v9541_v0 }
 0x5f2   : > { %6005 = vmatprep.subr.mxu1 %v5769_v44 }
 0x5f8   : > { %5996 = vmatmul.mubr.f32.vlgmr.msra.gmra.mrb[0].mxu1 %v5758_v48 }
 0x5f9   : > { %6009 = vmatpush1.msra.mxu1 %v5775_v49  ;;  %6072 = vmatprep.mubr.f32.mxu1 %v9541_v0  ;;  %v6752_v49 = vand.u32 4294901760, %v6751_v46 }
 0x5fa   : > { %6081 = vmatprep.subr.mxu1 %v5689_v35  ;;  %v9199_v35 = vld [vmem:[%s10252_s4 + $0x10] sm:$0xf] }
 0x5fb   : > { %v6664_v37 = vsel %vm318_vm0, %v9199_v35, 0 }
 0x600   : > { %6074 = vmatmul.mubr.f32.vlgmr.msra.gmra.mrb[0].mxu1 %v5756_v43 }
 0x601   : > { %6083 = vmatpush1.msra.mxu1 %v5691_v1  ;;  %6146 = vmatprep.mubr.f32.mxu1 %v9541_v0  ;;  %v6672_v1 = vand.u32 4294901760, %v6666_v39 }
 0x603   : > { %v6755_v45 = vsub.f32 %v6666_v39, %v6672_v1 }
 0x605   : > { %v6756_v48 = vand.u32 4294901760, %v6755_v45 }
 0x607   : > { %v6757_v24 = vsub.f32 %v6755_v45, %v6756_v48 }
 0x608   : > { %6148 = vmatmul.mubr.f32.vlgmr.msra.gmra.mrb[0].mxu1 %v5756_v43  ;;  %v6737_v43 = vand.u32 4294901760, %v6664_v37 }
 0x609   : > { %6260 = vmatprep.mubr.f32.mxu1 %v9541_v0  ;;  %v6758_v52 = vand.u32 4294901760, %v6757_v24 }
 0x60a   : > { %v6738_v44 = vsub.f32 %v6664_v37, %v6737_v43 }
 0x60c   : > { %v6739_v47 = vand.u32 4294901760, %v6738_v44 }
 0x60e   : > { %v6740_v50 = vsub.f32 %v6738_v44, %v6739_v47 }
 0x610   : > { %v6741_v51 = vand.u32 4294901760, %v6740_v50 }
 0x620   : > { %v6170_v59 = vpop.permute.xlu0 %6169 }
 0x621   : > { %v6168_v60 = vpop.permute.xlu1 %6167 }
 0x622   : > { %v6171_v6 = vsel %vm301_vm4, %v6168_v60, %v6170_v59  ;;  %v6172_v8 = vsel %vm301_vm4, %v6170_v59, %v6168_v60  ;;  %v10123_v59 = vand.u32 4294901760, %v7140_v56 }
 0x624   : > { %v6176_v63 = vpop.permute.xlu0 %6175 }
 0x625   : > { %v6174_v2 = vpop.permute.xlu1 %6173 }
 0x626   : > { %v6177_v9 = vsel %vm308_vm5, %v6174_v2, %v6176_v63  ;;  %v6178_v10 = vsel %vm308_vm5, %v6176_v63, %v6174_v2  ;;  %v7216_v63 = vsub.f32 %v7140_v56, %v10123_v59 }
 0x627   : > { %v6179_v11 = vsel %vm261_vm6, %v6177_v9, %v6172_v8  ;;  %v6180_v13 = vsel %vm262_vm7, %v6178_v10, %v6171_v6  ;;  %v10069_v14 = vsel %vm273_vm11, %v6172_v8, %v6177_v9  ;;  %v10073_v15 = vsel %vm274_vm10, %v6171_v6, %v6178_v10 }
 0x628   : > { %v6189_v16 = vsel %vm322_vm2, %v6179_v11, 0  ;;  %v6192_v17 = vsel %vm322_vm2, %v6180_v13, 0  ;;  %v7618_v20 = vpop.permute.xlu0 %7617  ;;  %v7146_v53 = vsel %vm322_vm2, %v10073_v15, 0  ;;  %v7217_v6 = vand.u32 4294901760, %v7216_v63 }
 0x629   : > { %v6194_v18 = vand.u32 4294901760, %v6192_v17  ;;  %v6196_v19 = vand.u32 4294901760, %v6189_v16  ;;  %v7616_v21 = vpop.permute.xlu1 %7615  ;;  %v7148_v55 = vand.u32 4294901760, %v7146_v53 }
 0x62a   : > { %v10078_v22 = vsel %vm3211_vm12, %v7616_v21, %v7618_v20  ;;  %v7218_v10 = vsub.f32 %v7216_v63, %v7217_v6 }
 0x62b   : > { %v6273_v25 = vsub.f32 %v6192_v17, %v6194_v18  ;;  %v6279_v26 = vsub.f32 %v6189_v16, %v6196_v19  ;;  %6195 = vmatprep.subr.mxu1 %v6194_v18  ;;  %7625 = vrot.lane.b32.xlu0 %v10078_v22, %s9546_s19  ;;  %v9201_v17 = vld [vmem:[%s10252_s4 + $0x18] sm:$0xf] }
 0x62c   : > { %6197 = vmatpush1.msra.mxu1 %v6196_v19  ;;  %v7219_v13 = vand.u32 4294901760, %v7218_v10 }
 0x62d   : > { %6266 = vmatmul.mubr.f32.vlgmr.msra.gmra.mrb[0].mxu1 %v6265_v5  ;;  %v7620_v27 = vpop.permute.xlu1 %7619  ;;  %v6274_v28 = vand.u32 4294901760, %v6273_v25  ;;  %v6280_v62 = vand.u32 4294901760, %v6279_v26 }
 0x62e   : > { %v10083_v29 = vsel %vm3211_vm12, %v7618_v20, %v7620_v27  ;;  %6346 = vmatprep.mubr.f32.mxu1 %v9541_v0 }
 0x62f   : > { %7627 = vrot.lane.b32.xlu1 %v10083_v29, %s9546_s19  ;;  %v6275_v30 = vsub.f32 %v6273_v25, %v6274_v28  ;;  %v6281_v31 = vsub.f32 %v6279_v26, %v6280_v62  ;;  %7631 = vrot.lane.b32.xlu0 %v10078_v22, %s9547_s20  ;;  %s9122_s19 = sshll.u32 %s244_s28, 4  ;;  %s10208_s19 = int_to_ptr.vmem [resolvable:$true] %s9122_s19 }
 0x630   : > { %s9477_s12 = scalar_lea.vmem %s10208_s19, 128 }
 0x631   : > { %v6276_v32 = vand.u32 4294901760, %v6275_v30  ;;  %v6282_v4 = vand.u32 4294901760, %v6281_v31  ;;  %p9478_p11 = scmp.ne.s32.totalorder %s10208_s19, %s9477_s12 }
 0x633   : > { %6277 = vmatprep.subr.mxu1 %v6276_v32  ;;  %7633 = vrot.lane.b32.xlu1 %v10083_v29, %s9547_s20  ;;  %p9479_p12 = pnand %p9478_p11, %p9623_p5 }
 0x634   : > { %9076 = vperm.xlu0 %9470, %v9073_v33   ;;  %6283 = vmatpush1.msra.mxu1 %v6282_v4 }
 0x635   : > { %6348 = vmatmul.mubr.f32.vlgmr.msra.gmra.mrb[0].mxu1 %v10052_v57  ;;  %6356 = vmatprep.subr.mxu1 %v6273_v25  ;;  %p9480_p13 = pneg %p9479_p12 }
 0x636   : > { %6359 = vmatpush1.msra.mxu1 %v6279_v26  ;;  %6422 = vmatprep.mubr.f32.mxu1 %v9541_v0  ;;  %v7644_v26 = vsel %vm318_vm0, %v9201_v17, 0 }
 0x637   : > { %6432 = vmatprep.subr.mxu1 %v6194_v18  ;;  %v7719_v33 = vand.u32 4294901760, %v7644_v26 }
 0x639   : > { %v7720_v34 = vsub.f32 %v7644_v26, %v7719_v33 }
 0x63b   : > { %v7721_v35 = vand.u32 4294901760, %v7720_v34 }
 0x63d   : > { %6425 = vmatmul.mubr.f32.vlgmr.msra.gmra.mrb[0].mxu1 %v6262_v58  ;;  %v7227_v58 = vsub.f32 %v7146_v53, %v7148_v55 }
 0x63e   : > { %6434 = vmatpush1.msra.mxu1 %v6196_v19  ;;  %6497 = vmatprep.mubr.f32.mxu1 %v9541_v0 }
 0x63f   : > { %6510 = vmatprep.subr.mxu1 %v6274_v28 }
 0x645   : > { %6501 = vmatmul.mubr.f32.vlgmr.msra.gmra.mrb[0].mxu1 %v6263_v61  ;;  %v7228_v61 = vand.u32 4294901760, %v7227_v58 }
 0x646   : > { %6514 = vmatpush1.msra.mxu1 %v6280_v62  ;;  %6577 = vmatprep.mubr.f32.mxu1 %v9541_v0 }
 0x647   : > { %6586 = vmatprep.subr.mxu1 %v6194_v18  ;;  %v7229_v3 = vsub.f32 %v7227_v58, %v7228_v61 }
 0x649   : > { %v7230_v9 = vand.u32 4294901760, %v7229_v3 }
 0x64d   : > { %6579 = vmatmul.mubr.f32.vlgmr.msra.gmra.mrb[0].mxu1 %v10052_v57 }
 0x64e   : > { %6588 = vmatpush1.msra.mxu1 %v6196_v19  ;;  %6651 = vmatprep.mubr.f32.mxu1 %v9541_v0 }
 0x64f   : > { %6671 = vmatprep.subr.mxu1 %v6670_v36 }
 0x655   : > { %6653 = vmatmul.mubr.f32.vlgmr.msra.gmra.mrb[0].mxu1 %v10052_v57  ;;  %v7143_v57 = vsel %vm322_vm2, %v10069_v14, 0 }
 0x656   : > { %6673 = vmatpush1.msra.mxu1 %v6672_v1  ;;  %6736 = vmatprep.mubr.f32.mxu1 %v9541_v0  ;;  %v7150_v60 = vand.u32 4294901760, %v7143_v57 }
 0x657   : > { %6753 = vmatprep.subr.mxu1 %v6752_v49 }
 0x658   : > { %v7233_v2 = vsub.f32 %v7143_v57, %v7150_v60 }
 0x65a   : > { %v7234_v8 = vand.u32 4294901760, %v7233_v2 }
 0x65c   : > { %v7235_v11 = vsub.f32 %v7233_v2, %v7234_v8 }
 0x65d   : > { %6742 = vmatmul.mubr.f32.vlgmr.msra.gmra.mrb[0].mxu1 %v6741_v51 }
 0x65e   : > { %6759 = vmatpush1.msra.mxu1 %v6758_v52  ;;  %6822 = vmatprep.mubr.f32.mxu1 %v9541_v0  ;;  %v7236_v14 = vand.u32 4294901760, %v7235_v11 }
 0x65f   : > { %6832 = vmatprep.subr.mxu1 %v6749_v38  ;;  %v7722_v38 = vsub.f32 %v7720_v34, %v7721_v35 }
 0x665   : > { %6824 = vmatmul.mubr.f32.vlgmr.msra.gmra.mrb[0].mxu1 %v6737_v43 }
 0x666   : > { %6835 = vmatpush1.msra.mxu1 %v6755_v45  ;;  %6898 = vmatprep.mubr.f32.mxu1 %v9541_v0 }
 0x667   : > { %6908 = vmatprep.subr.mxu1 %v6670_v36 }
 0x66d   : > { %6901 = vmatmul.mubr.f32.vlgmr.msra.gmra.mrb[0].mxu1 %v6738_v44  ;;  %v9202_v44 = vld [vmem:[%s10252_s4 + $0x1c] sm:$0xf] }
 0x66e   : > { %6910 = vmatpush1.msra.mxu1 %v6672_v1  ;;  %6973 = vmatprep.mubr.f32.mxu1 %v9541_v0  ;;  %v8122_v46 = vsel %vm318_vm0, %v9202_v44, 0 }
 0x66f   : > { %6986 = vmatprep.subr.mxu1 %v6750_v23  ;;  %v8126_v23 = vsel %vm322_vm2, %v10083_v29, 0  ;;  %v8195_v49 = vand.u32 4294901760, %v8122_v46 }
 0x670   : > { %v8128_v45 = vand.u32 4294901760, %v8126_v23 }
 0x671   : > { %v8196_v24 = vsub.f32 %v8122_v46, %v8195_v49 }
 0x673   : > { %v8197_v53 = vand.u32 4294901760, %v8196_v24 }
 0x675   : > { %6977 = vmatmul.mubr.f32.vlgmr.msra.gmra.mrb[0].mxu1 %v6739_v47  ;;  %v8124_v47 = vsel %vm322_vm2, %v10078_v22, 0  ;;  %v8198_v56 = vsub.f32 %v8196_v24, %v8197_v53 }
 0x676   : > { %6990 = vmatpush1.msra.mxu1 %v6756_v48  ;;  %7053 = vmatprep.mubr.f32.mxu1 %v9541_v0  ;;  %v8207_v48 = vsub.f32 %v8126_v23, %v8128_v45  ;;  %v8130_v50 = vand.u32 4294901760, %v8124_v47 }
 0x677   : > { %7062 = vmatprep.subr.mxu1 %v6670_v36  ;;  %v8199_v57 = vand.u32 4294901760, %v8198_v56 }
 0x678   : > { %v8208_v29 = vand.u32 4294901760, %v8207_v48  ;;  %v8213_v51 = vsub.f32 %v8124_v47, %v8130_v50 }
 0x67a   : > { %v8209_v52 = vsub.f32 %v8207_v48, %v8208_v29  ;;  %v8214_v54 = vand.u32 4294901760, %v8213_v51 }
 0x67c   : > { %v8215_v22 = vsub.f32 %v8213_v51, %v8214_v54 }
 0x67d   : > { %7055 = vmatmul.mubr.f32.vlgmr.msra.gmra.mrb[0].mxu1 %v6737_v43 }
 0x67e   : > { %7064 = vmatpush1.msra.mxu1 %v6672_v1  ;;  %7127 = vmatprep.mubr.f32.mxu1 %v9541_v0 }
 0x67f   : > { %7149 = vmatprep.subr.mxu1 %v7148_v55 }
 0x685   : > { %7129 = vmatmul.mubr.f32.vlgmr.msra.gmra.mrb[0].mxu1 %v6737_v43  ;;  %v7723_v43 = vand.u32 4294901760, %v7722_v38 }
 0x686   : > { %7151 = vmatpush1.msra.mxu1 %v7150_v60  ;;  %7214 = vmatprep.mubr.f32.mxu1 %v9541_v0 }
 0x687   : > { %7231 = vmatprep.subr.mxu1 %v7230_v9 }
 0x68d   : > { %7220 = vmatmul.mubr.f32.vlgmr.msra.gmra.mrb[0].mxu1 %v7219_v13 }
 0x68e   : > { %7237 = vmatpush1.msra.mxu1 %v7236_v14  ;;  %7300 = vmatprep.mubr.f32.mxu1 %v9541_v0 }
 0x68f   : > { %7310 = vmatprep.subr.mxu1 %v7227_v58  ;;  %v8216_v58 = vand.u32 4294901760, %v8215_v22 }
 0x695   : > { %7302 = vmatmul.mubr.f32.vlgmr.msra.gmra.mrb[0].mxu1 %v10123_v59 }
 0x696   : > { %7313 = vmatpush1.msra.mxu1 %v7233_v2  ;;  %7376 = vmatprep.mubr.f32.mxu1 %v9541_v0 }
 0x697   : > { %7386 = vmatprep.subr.mxu1 %v7148_v55 }
 0x69d   : > { %7379 = vmatmul.mubr.f32.vlgmr.msra.gmra.mrb[0].mxu1 %v7216_v63  ;;  %v7626_v15 = vpop.permute.xlu0 %7625 }
 0x69e   : > { %7388 = vmatpush1.msra.mxu1 %v7150_v60  ;;  %7451 = vmatprep.mubr.f32.mxu1 %v9541_v0 }
 0x69f   : > { %7464 = vmatprep.subr.mxu1 %v7228_v61 }
 0x6a1   : > { %v7628_v16 = vpop.permute.xlu1 %7627  ;;  %v7632_v18 = vpop.permute.xlu0 %7631 }
 0x6a2   : > { %v7629_v19 = vsel %vm301_vm4, %v7626_v15, %v7628_v16  ;;  %v7630_v21 = vsel %vm301_vm4, %v7628_v16, %v7626_v15 }
 0x6a5   : > { %v7634_v20 = vpop.permute.xlu1 %7633  ;;  %7455 = vmatmul.mubr.f32.vlgmr.msra.gmra.mrb[0].mxu1 %v7217_v6 }
 0x6a6   : > { %v7635_v5 = vsel %vm308_vm5, %v7632_v18, %v7634_v20  ;;  %v7636_v25 = vsel %vm308_vm5, %v7634_v20, %v7632_v18  ;;  %7468 = vmatpush1.msra.mxu1 %v7234_v8  ;;  %7531 = vmatprep.mubr.f32.mxu1 %v9541_v0 }
 0x6a7   : > { %v7637_v27 = vsel %vm261_vm6, %v7635_v5, %v7630_v21  ;;  %v7638_v28 = vsel %vm262_vm7, %v7636_v25, %v7629_v19  ;;  %v10151_v62 = vsel %vm273_vm11, %v7630_v21, %v7635_v5  ;;  %v10155_v30 = vsel %vm274_vm10, %v7629_v19, %v7636_v25  ;;  %7540 = vmatprep.subr.mxu1 %v7148_v55 }
 0x6a8   : > { %v7650_v40 = vsel %vm322_vm2, %v7638_v28, 0  ;;  %v7647_v31 = vsel %vm322_vm2, %v7637_v27, 0  ;;  %v8210_v55 = vand.u32 4294901760, %v8209_v52  ;;  %v8601_v2 = vsel %vm322_vm2, %v10151_v62, 0 }
 0x6a9   : > { %v7652_v32 = vand.u32 4294901760, %v7650_v40  ;;  %v7654_v4 = vand.u32 4294901760, %v7647_v31  ;;  %v8608_v8 = vand.u32 4294901760, %v8601_v2 }
 0x6ab   : > { %v7731_v41 = vsub.f32 %v7650_v40, %v7652_v32  ;;  %v7737_v12 = vsub.f32 %v7647_v31, %v7654_v4  ;;  %v8691_v11 = vsub.f32 %v8601_v2, %v8608_v8 }
 0x6ad   : > { %7533 = vmatmul.mubr.f32.vlgmr.msra.gmra.mrb[0].mxu1 %v10123_v59  ;;  %v7732_v42 = vand.u32 4294901760, %v7731_v41  ;;  %v7738_v36 = vand.u32 4294901760, %v7737_v12  ;;  %v8692_v15 = vand.u32 4294901760, %v8691_v11 }
 0x6ae   : > { %7542 = vmatpush1.msra.mxu1 %v7150_v60  ;;  %7605 = vmatprep.mubr.f32.mxu1 %v9541_v0  ;;  %v9203_v60 = vld [vmem:[%s10252_s4 + $0x20] sm:$0xf] }
 0x6af   : > { %7653 = vmatprep.subr.mxu1 %v7652_v32  ;;  %v7733_v7 = vsub.f32 %v7731_v41, %v7732_v42  ;;  %v7739_v39 = vsub.f32 %v7737_v12, %v7738_v36  ;;  %v8598_v63 = vsel %vm318_vm0, %v9203_v60, 0  ;;  %v8693_v18 = vsub.f32 %v8691_v11, %v8692_v15 }
 0x6b0   : > { %v8673_v6 = vand.u32 4294901760, %v8598_v63 }
 0x6b1   : > { %v7734_v37 = vand.u32 4294901760, %v7733_v7  ;;  %v7740_v1 = vand.u32 4294901760, %v7739_v39  ;;  %v8694_v20 = vand.u32 4294901760, %v8693_v18 }
 0x6b2   : > { %v8674_v10 = vsub.f32 %v8598_v63, %v8673_v6 }
 0x6b3   : > { %v9077_v21 = vpop.permute.xlu0 %9076 }
 0x6b4   : > { %v8675_v14 = vand.u32 4294901760, %v8674_v10 }
 0x6b5   : > { %7607 = vmatmul.mubr.f32.vlgmr.msra.gmra.mrb[0].mxu1 %v10123_v59  ;;  %v8604_v59 = vsel %vm322_vm2, %v10155_v30, 0 }
 0x6b6   : > { %7655 = vmatpush1.msra.mxu1 %v7654_v4  ;;  %7718 = vmatprep.mubr.f32.mxu1 %v9541_v0  ;;  %v8606_v61 = vand.u32 4294901760, %v8604_v59  ;;  %v8676_v17 = vsub.f32 %v8674_v10, %v8675_v14 }
 0x6b7   : > { %7735 = vmatprep.subr.mxu1 %v7734_v37 }
 0x6b8   : > { %v8685_v3 = vsub.f32 %v8604_v59, %v8606_v61  ;;  %v8677_v19 = vand.u32 4294901760, %v8676_v17 }
 0x6ba   : > { %v8686_v9 = vand.u32 4294901760, %v8685_v3 }
 0x6bc   : > { %v8687_v13 = vsub.f32 %v8685_v3, %v8686_v9 }
 0x6bd   : > { %7724 = vmatmul.mubr.f32.vlgmr.msra.gmra.mrb[0].mxu1 %v7723_v43  ;;  %v9476_v43 = vld [vmem:[%s9640_s13] sm:$0xff]  ;;  %s9481_s13 = sshll.u32 %s9549_s25, 4  ;;  %s9482_s13 = int_to_ptr.vmem [resolvable:$false] %s9481_s13 }
 0x6be   : > { %7741 = vmatpush1.msra.mxu1 %v7740_v1  ;;  %7804 = vmatprep.mubr.f32.mxu1 %v9541_v0  ;;  %v8688_v16 = vand.u32 4294901760, %v8687_v13  ;;  %s9483_s14 = scalar_lea.vmem %s9482_s13, 256  ;;  %p9484_p0 = scmp.lt.s32.totalorder %s10208_s19, %s9482_s13 }
 0x6bf   : > { %7814 = vmatprep.subr.mxu1 %v7731_v41  ;;  %p9485_p1 = scmp.lt.s32.totalorder %s9483_s14, %s9477_s12 }
 0x6c1   : > { %p9486_p2 = por %p9485_p1, %p9484_p0 }
 0x6c3   : > { %p9487_p3 = pnand %p9486_p2, %p9480_p13 }
 0x6c5   : > { %7806 = vmatmul.mubr.f32.vlgmr.msra.gmra.mrb[0].mxu1 %v7719_v33 }
 0x6c6   : > { %7817 = vmatpush1.msra.mxu1 %v7737_v12  ;;  %7880 = vmatprep.mubr.f32.mxu1 %v9541_v0 }
 0x6c7   : > { %7890 = vmatprep.subr.mxu1 %v7652_v32 }
 0x6cd   : > { %7883 = vmatmul.mubr.f32.vlgmr.msra.gmra.mrb[0].mxu1 %v7720_v34 }
 0x6ce   : > { %7892 = vmatpush1.msra.mxu1 %v7654_v4  ;;  %7955 = vmatprep.mubr.f32.mxu1 %v9541_v0 }
 0x6cf   : > { %7968 = vmatprep.subr.mxu1 %v7732_v42 }
 0x6d5   : > { %7959 = vmatmul.mubr.f32.vlgmr.msra.gmra.mrb[0].mxu1 %v7721_v35 }
 0x6d6   : > { %7972 = vmatpush1.msra.mxu1 %v7738_v36  ;;  %8035 = vmatprep.mubr.f32.mxu1 %v9541_v0 }
 0x6d7   : > { %8044 = vmatprep.subr.mxu1 %v7652_v32 }
 0x6dd   : > { %8037 = vmatmul.mubr.f32.vlgmr.msra.gmra.mrb[0].mxu1 %v7719_v33 }
 0x6de   : > { %8046 = vmatpush1.msra.mxu1 %v7654_v4  ;;  %8109 = vmatprep.mubr.f32.mxu1 %v9541_v0 }
 0x6df   : > { %8129 = vmatprep.subr.mxu1 %v8128_v45 }
 0x6e5   : > { %8111 = vmatmul.mubr.f32.vlgmr.msra.gmra.mrb[0].mxu1 %v7719_v33 }
 0x6e6   : > { %8131 = vmatpush1.msra.mxu1 %v8130_v50  ;;  %8194 = vmatprep.mubr.f32.mxu1 %v9541_v0 }
 0x6e7   : > { %8211 = vmatprep.subr.mxu1 %v8210_v55 }
 0x6ed   : > { %8200 = vmatmul.mubr.f32.vlgmr.msra.gmra.mrb[0].mxu1 %v8199_v57 }
 0x6ee   : > { %8217 = vmatpush1.msra.mxu1 %v8216_v58  ;;  %8280 = vmatprep.mubr.f32.mxu1 %v9541_v0 }
 0x6ef   : > { %8290 = vmatprep.subr.mxu1 %v8207_v48 }
 0x6f5   : > { %8282 = vmatmul.mubr.f32.vlgmr.msra.gmra.mrb[0].mxu1 %v8195_v49 }
 0x6f6   : > { %8293 = vmatpush1.msra.mxu1 %v8213_v51  ;;  %8356 = vmatprep.mubr.f32.mxu1 %v9541_v0 }
 0x6f7   : > { %8366 = vmatprep.subr.mxu1 %v8128_v45 }
 0x6fd   : > { %8359 = vmatmul.mubr.f32.vlgmr.msra.gmra.mrb[0].mxu1 %v8196_v24 }
 0x6fe   : > { %8368 = vmatpush1.msra.mxu1 %v8130_v50  ;;  %8431 = vmatprep.mubr.f32.mxu1 %v9541_v0 }
 0x6ff   : > { %8444 = vmatprep.subr.mxu1 %v8208_v29 }
 0x705   : > { %8435 = vmatmul.mubr.f32.vlgmr.msra.gmra.mrb[0].mxu1 %v8197_v53 }
 0x706   : > { %8448 = vmatpush1.msra.mxu1 %v8214_v54  ;;  %8511 = vmatprep.mubr.f32.mxu1 %v9541_v0 }
 0x707   : > { %8520 = vmatprep.subr.mxu1 %v8128_v45 }
 0x70d   : > { %8513 = vmatmul.mubr.f32.vlgmr.msra.gmra.mrb[0].mxu1 %v8195_v49 }
 0x70e   : > { %8522 = vmatpush1.msra.mxu1 %v8130_v50  ;;  %8585 = vmatprep.mubr.f32.mxu1 %v9541_v0 }
 0x70f   : > { %8607 = vmatprep.subr.mxu1 %v8606_v61 }
 0x715   : > { %8587 = vmatmul.mubr.f32.vlgmr.msra.gmra.mrb[0].mxu1 %v8195_v49 }
 0x716   : > { %8609 = vmatpush1.msra.mxu1 %v8608_v8  ;;  %8672 = vmatprep.mubr.f32.mxu1 %v9541_v0 }
 0x717   : > { %8689 = vmatprep.subr.mxu1 %v8688_v16 }
 0x71d   : > { %8678 = vmatmul.mubr.f32.vlgmr.msra.gmra.mrb[0].mxu1 %v8677_v19 }
 0x71e   : > { %8695 = vmatpush1.msra.mxu1 %v8694_v20  ;;  %8758 = vmatprep.mubr.f32.mxu1 %v9541_v0 }
 0x71f   : > { %8768 = vmatprep.subr.mxu1 %v8685_v3 }
 0x725   : > { %8760 = vmatmul.mubr.f32.vlgmr.msra.gmra.mrb[0].mxu1 %v8673_v6 }
 0x726   : > { %8771 = vmatpush1.msra.mxu1 %v8691_v11  ;;  %8834 = vmatprep.mubr.f32.mxu1 %v9541_v0 }
 0x727   : > { %8844 = vmatprep.subr.mxu1 %v8606_v61 }
 0x72d   : > { %8837 = vmatmul.mubr.f32.vlgmr.msra.gmra.mrb[0].mxu1 %v8674_v10 }
 0x72e   : > { %8846 = vmatpush1.msra.mxu1 %v8608_v8  ;;  %8909 = vmatprep.mubr.f32.mxu1 %v9541_v0 }
 0x72f   : > { %8922 = vmatprep.subr.mxu1 %v8686_v9 }
 0x735   : > { %8913 = vmatmul.mubr.f32.vlgmr.msra.gmra.mrb[0].mxu1 %v8675_v14 }
 0x736   : > { %8926 = vmatpush1.msra.mxu1 %v8692_v15  ;;  %8989 = vmatprep.mubr.f32.mxu1 %v9541_v0 }
 0x737   : > { %8998 = vmatprep.subr.mxu1 %v8606_v61 }
 0x73d   : > { %8991 = vmatmul.mubr.f32.vlgmr.msra.gmra.mrb[0].mxu1 %v8673_v6 }
 0x73e   : > { %9000 = vmatpush1.msra.mxu1 %v8608_v8  ;;  %9063 = vmatprep.mubr.f32.mxu1 %v9541_v0 }
 0x745   : > { %9065 = vmatmul.mubr.f32.vlgmr.msra.gmra.mrb[0].mxu1 %v8673_v6 }
 0x818   : > { %v9066_v5 = vpop.f32.mrb[0].mxu1 }
 0x819   : > { %v9079_v25 = vadd.f32 %v9077_v21, %v9066_v5  ;;  %v9068_v26 = vpop.f32.mrb[1].mxu1 }
 0x81a   : > { %v9080_v27 = vadd.f32 %v9077_v21, %v9068_v26 }
 0x81b   : > { %v9081_v28 = vsel %vm322_vm2, %v9079_v25, 0.0 }
 0x81c   : > { %v9082_v62 = vsel %vm322_vm2, %v9080_v27, 0.0 }
 0x81d   : > { %v9083_v30 = vadd.f32 %v9082_v62, %v9081_v28 }
 0x81f   : > { %9084 = vadd.xlane.f32.xlu1 %v9083_v30 }
 0x8ac   : > { %v9085_v40 = vpop.xlane.xlu1 %9084 }
 0x8ad   : > { %v9086_v31 = vmul.f32 0.00390625, %v9085_v40 }
 0x8af   : > { %v9087_v32 = vsub.f32 %v9079_v25, %v9086_v31  ;;  %v9088_v33 = vsub.f32 %v9080_v27, %v9086_v31 }
 0x8b1   : > { %v9089_v41 = vmul.f32 %v9087_v32, %v9087_v32  ;;  %v9090_v0 = vmul.f32 %v9088_v33, %v9088_v33 }
 0x8b3   : > { %v9091_v4 = vsel %vm322_vm2, %v9089_v41, 0.0  ;;  %v9092_v42 = vsel %vm322_vm2, %v9090_v0, 0.0 }
 0x8b4   : > { %v9093_v34 = vadd.f32 %v9092_v42, %v9091_v4 }
 0x8b6   : > { %9094 = vadd.xlane.f32.xlu0 %v9093_v34 }
 0x943   : > { %v9095_v12 = vpop.xlane.xlu0 %9094 }
 0x944   : > { %v9096_v7 = vmul.f32 0.00390625, %v9095_v12 }
 0x946   : > { %v9097_v35 = vadd.f32 1e-05, %v9096_v7 }
 0x948   : > { %9474 = vrsqrt.f32 %v9097_v35 }
 0x952   : > { %v9475_v36 = vpop.eup %9474 }
 0x953   : > { %v9099_v37 = vmul.f32 %v9475_v36, %v9087_v32  ;;  %v9100_v38 = vmul.f32 %v9475_v36, %v9088_v33 }
 0x955   : > { %v9103_v39 = vcombine.low %v9099_v37, %v9100_v38 }
 0x957   : > { %v9105_v1 = vadd.f32 %v9476_v43, %v9103_v39 }
 0x959   : > { %9106 = vst [vmem:[%s244_s28] sm:$0xff] %v9105_v1 }
 0x95a   : > { %9490 = shalt.err (!%p9487_p3)
}
 0x95b   : > { %s9491_s15 = scalar_lea.hbm %s10206_s9, 128  ;;  %s9495_s10 = scalar_lea.hbm %s10254_s6, 256 }
 0x95c   : > { %p9492_p4 = scmp.ne.s32.totalorder %s10206_s9, %s9491_s15  ;;  %p9496_p9 = scmp.lt.u32.totalorder %s10206_s9, %s10254_s6 }
 0x95d   : > { %p9497_p10 = scmp.lt.u32.totalorder %s9495_s10, %s9491_s15  ;;  %p9499_p12 = scmp.lt.u32.totalorder %s9491_s15, %s10206_s9 }
 0x95e   : > { %p9493_p7 = pnand %p9492_p4, %p9623_p5 }
 0x95f   : > { %p9498_p11 = por %p9497_p10, %p9496_p9 }
 0x960   : > { %p9494_p8 = pneg %p9493_p7 }
 0x961   : > { %p9500_p13 = por %p9499_p12, %p9498_p11 }
 0x963   : > { %p9501_p0 = pnand %p9500_p13, %p9494_p8 }
 0x965   : > { %9504 = shalt.err (!%p9501_p0)
}
 0x966   : > { %9423 = dma.vmem_to_hbm [thread:$0]  (%p9623_p5), %s10208_s19, 128, %s10206_s9, %s9108_s11  }
 0x967 PF: > { %p9429_p1 = scmp.ge.s32.totalorder %s9539_s24, 2  ;;  %s9134_s28 = sand.u32 1, %s9527_s21  }
 0x968   : > { %s9135_s29 = scalar_lea.sflag [#allocation3], %s9134_s28 }
 0x969   : > { %p9426_p2 = pnand %p9429_p1, %p9627_p6 }
 0x96b   : > { %9522 = dma.done.wait (!%p9426_p2), %s9135_s29, 128  }
 0x96c   : > { %9524 = vsyncadd (!%p9426_p2), %s9135_s29, 4294967168  ;;  %p16_p3 = scmp.ge.s32.totalorder %s9610_s27, 4   ;;  %s10257_s21 = smov %s9531_s22 }
 0x96d   : > { %s10258_s22 = smov %s9535_s23  ;;  %s10259_s23 = smov %s9621_s30 }
 0x96e   : > { %s10260_s24 = smov %s9610_s27  ;;  %18 = sbr.rel (!%p16_p3) target bundleno = 3 (0x3), region = 95 }
 0x975   :  { %9140 = vsyncpa [#allocation3], 1 }
 0x976   :  { %9142 = vsyncpa [#allocation3 + $0x1], 1 }

</bundles_post_ra>
